<compile_context>
chip_gen: v7x
topology: tpu7x:2x2x1
jax: 0.10.0
libtpu: 0.0.40
codegen_flags: <defaults>
</compile_context>

<pallas_src>
import functools

import numpy as np
import jax
import jax.numpy as jnp
from jax import lax
from jax.experimental import pallas as pl
from jax.experimental.pallas import tpu as pltpu


# ----------------------- host-side constant / weight prep ------------------ #
def _build_shift_masks(Ho, Wo):
    """masks[t, r, 0] = 1 iff 3x3 tap t=(di,dj) at output row r=(oh,ow) reads an
    in-image source position ('same' zero padding otherwise)."""
    m = np.zeros((9, Ho * Wo, 1), np.float32)
    for t in range(9):
        di, dj = t // 3 - 1, t % 3 - 1
        for oh in range(Ho):
            for ow in range(Wo):
                if 0 <= oh + di < Ho and 0 <= ow + dj < Wo:
                    m[t, oh * Wo + ow, 0] = 1.0
    return m


def _fold_conv1(w1):
    """conv1 (4x4, s2, p1) folded to a 3x3 'same' conv over the space-to-depth
    (factor 4) input grid.  Output channel groups (p, q) are the four stride-2
    parity slices of conv1's output (its space-to-depth-by-2)."""
    kh, kw, cin, nh2 = w1.shape
    assert (kh, kw) == (4, 4)
    w = np.zeros((3, 3, 16 * cin, 4 * nh2), np.float32)
    for dI in (-1, 0, 1):
        for dJ in (-1, 0, 1):
            for u in range(4):
                for v in range(4):
                    for p in range(2):
                        for q in range(2):
                            i = 4 * dI + u + 1 - 2 * p
                            j = 4 * dJ + v + 1 - 2 * q
                            if 0 <= i < 4 and 0 <= j < 4:
                                w[dI + 1, dJ + 1,
                                  (u * 4 + v) * cin:(u * 4 + v + 1) * cin,
                                  (p * 2 + q) * nh2:(p * 2 + q + 1) * nh2] = w1[i, j]
    return w.reshape(9 * 16 * cin, 4 * nh2)


def _fold_conv2(w2):
    """conv2 (4x4, s2, p1) folded to a 3x3 'same' conv over the (H/4, W/4) grid,
    consuming conv1's parity-sliced channel groups."""
    kh, kw, nh2, nh = w2.shape
    assert (kh, kw) == (4, 4)
    w = np.zeros((3, 3, 4 * nh2, nh), np.float32)
    for di in (-1, 0, 1):
        for dj in (-1, 0, 1):
            for p in range(2):
                for q in range(2):
                    i = 2 * di + p + 1
                    j = 2 * dj + q + 1
                    if 0 <= i < 4 and 0 <= j < 4:
                        w[di + 1, dj + 1,
                          (p * 2 + q) * nh2:(p * 2 + q + 1) * nh2, :] = w2[i, j]
    return w.reshape(9 * 4 * nh2, nh)


def pack_params(params, compute_dtype=jnp.bfloat16):
    """Fold / flatten / pad the HWIO conv weights into the matrices the kernel
    consumes.  Matmul weights are cast to `compute_dtype` (the MXU is
    bf16-native on v5e/v6e/v7x); biases stay f32 (added after the f32 accum)."""
    assert len(params['res']) >= 1
    w1 = np.asarray(params['w1'], np.float32)
    w2 = np.asarray(params['w2'], np.float32)
    w3 = np.asarray(params['w3'], np.float32)
    wp = np.asarray(params['wp'], np.float32)
    nh2 = w1.shape[-1]
    nh = w2.shape[-1]
    cl2 = wp.shape[-1]
    out_pad = max(128, ((cl2 + 127) // 128) * 128)        # lane-dense store

    w1big = _fold_conv1(w1)                                # (144*cin, 4*nh2)
    w2big = _fold_conv2(w2)                                # (9*4*nh2, nh)
    w3flat = w3.reshape(9 * nh, nh)
    w3r = np.stack([np.asarray(r3, np.float32).reshape(9 * nh, r3.shape[-1])
                    for (r3, _) in params['res']])
    w1r = np.stack([np.asarray(r1, np.float32).reshape(r1.shape[2], r1.shape[3])
                    for (_, r1) in params['res']])
    wp_pad = np.zeros((nh, out_pad), np.float32)
    wp_pad[:, :cl2] = wp.reshape(nh, cl2)
    bp_pad = np.zeros((1, out_pad), np.float32)
    bp_pad[0, :cl2] = np.asarray(params['bp'], np.float32)

    cd = compute_dtype
    return (jnp.asarray(w1big, cd),
            jnp.asarray(np.tile(np.asarray(params['b1'], np.float32), 4)[None, :]),
            jnp.asarray(w2big, cd),
            jnp.asarray(np.asarray(params['b2'], np.float32)[None, :]),
            jnp.asarray(w3flat, cd),
            jnp.asarray(np.asarray(params['b3'], np.float32)[None, :]),
            jnp.asarray(w3r, cd),
            jnp.asarray(w1r, cd),
            jnp.asarray(wp_pad, cd),
            jnp.asarray(bp_pad))


def _space_to_depth4(x):
    """(N, H, W, C) -> (N*(H/4)*(W/4), 16*C); channel order (u, v, c)."""
    N, H, W, C = x.shape
    Ho, Wo = H // 4, W // 4
    xs = x.reshape(N, Ho, 4, Wo, 4, C).transpose(0, 1, 3, 2, 4, 5)
    return xs.reshape(N * Ho * Wo, 16 * C)


def _probe_row_roll():
    """pltpu.roll is documented to follow jnp.roll semantics.  Probe the real
    lowering once so (a) an unsupported sublane roll falls back to a
    slice+concat shift and (b) a convention mismatch can't silently mis-wire
    the conv taps.  Returns (use_hw_roll, roll_sign)."""
    x = jnp.arange(16 * 128, dtype=jnp.float32).reshape(16, 128)

    def k(x_ref, o_ref):
        o_ref[...] = pltpu.roll(x_ref[...], 1, 0)

    try:
        y = pl.pallas_call(
            k, out_shape=jax.ShapeDtypeStruct((16, 128), jnp.float32))(x)
    except Exception:
        return False, -1
    if bool(jnp.array_equal(y, jnp.roll(x, 1, axis=0))):
        return True, -1        # result[i] = x[i - shift]  (jnp.roll convention)
    if bool(jnp.array_equal(y, jnp.roll(x, -1, axis=0))):
        return True, 1
    return False, -1


# ------------------------------ Pallas kernel ------------------------------ #
def _encoder_kernel(x0_ref, mask_ref, w1_ref, b1_ref, w2_ref, b2_ref,
                    w3_ref, b3_ref, w3r_ref, w1r_ref, wp_ref, bp_ref, o_ref,
                    *, mb, wo, n_res, compute_dtype, use_hw_roll, roll_sign):
    f32 = jnp.float32

    def mm(a, w):
        # MXU matmul: bf16 (or f32) operands, f32 accumulation.
        return jnp.dot(a.astype(compute_dtype), w, preferred_element_type=f32)

    masks = mask_ref[...]                                  # (9, mb, 1) f32

    def shift_rows(a, s):
        # result[r] = a[(r + s) % mb]; boundary rows are masked by the caller.
        if use_hw_roll:
            return pltpu.roll(a, (roll_sign * s) % mb, 0)  # XLU sublane rotate
        s = s % mb
        return jnp.concatenate([a[s:], a[:s]], axis=0)

    def conv3x3(inp, wflat):
        # 3x3 'same' conv on this image's row-major (Ho, Wo) grid:
        # 8 shifts + boundary masks -> (mb, 9*C) slab -> ONE big-K matmul.
        cols = []
        for t in range(9):
            di, dj = t // 3 - 1, t % 3 - 1
            if di == 0 and dj == 0:
                cols.append(inp)
            else:
                cols.append(shift_rows(inp, di * wo + dj) * masks[t])
        return mm(jnp.concatenate(cols, axis=-1), wflat)

    x = x0_ref[...]                                        # (mb, 16*Cin) f32
    # conv1 (folded 4x4 s2 p1) + bias + ReLU -> parity-sliced channel groups.
    x = jnp.maximum(conv3x3(x, w1_ref[...]) + b1_ref[...], 0.0)
    # conv2 (folded 4x4 s2 p1) + bias + ReLU.
    x = jnp.maximum(conv3x3(x, w2_ref[...]) + b2_ref[...], 0.0)
    # conv3 (3x3 s1 p1) + bias.
    x = conv3x3(x, w3_ref[...]) + b3_ref[...]
    # Residual stack: x += conv1x1(relu(conv3x3(relu(x)))) (bias-free convs).
    for l in range(n_res):
        h = jnp.maximum(conv3x3(jnp.maximum(x, 0.0), w3r_ref[l]), 0.0)
        x = x + mm(h, w1r_ref[l])
    # Trailing ReLU + pre-latent 1x1 conv (zero-padded to a 128-lane store).
    o_ref[...] = (mm(jnp.maximum(x, 0.0), wp_ref[...]) + bp_ref[...]).astype(o_ref.dtype)


# ------------------------------- wrapper ------------------------------------ #
def encoder_forward(packed, x, *, latent_dim, compute_dtype=jnp.bfloat16,
                    use_hw_roll=True, roll_sign=-1):
    """x: (N, H, W, Cin) f32 NHWC -> (mean, logvar), each (N, H//4, W//4, latent)."""
    (w1big, b1rep, w2big, b2, w3flat, b3, w3r, w1r, wp_pad, bp_pad) = packed
    N, H, W, _ = x.shape
    assert H % 4 == 0 and W % 4 == 0
    Ho, Wo = H // 4, W // 4
    mb = Ho * Wo
    assert mb % 8 == 0, "per-image row count must be sublane (8) aligned"
    n_res = w3r.shape[0]
    out_pad = wp_pad.shape[-1]

    x0 = _space_to_depth4(x)                               # (N*mb, 16*Cin)
    masks = jnp.asarray(_build_shift_masks(Ho, Wo))        # (9, mb, 1)

    def _full_spec(a):
        ndim = a.ndim
        return pl.BlockSpec(a.shape, lambda n: (0,) * ndim)

    kernel = functools.partial(
        _encoder_kernel, mb=mb, wo=Wo, n_res=n_res, compute_dtype=compute_dtype,
        use_hw_roll=use_hw_roll, roll_sign=roll_sign)

    out = pl.pallas_call(
        kernel,
        out_shape=jax.ShapeDtypeStruct((N * mb, out_pad), jnp.float32),
        grid=(N,),
        in_specs=[
            pl.BlockSpec((mb, x0.shape[-1]), lambda n: (n, 0)),   # per-image rows
            _full_spec(masks),
            _full_spec(w1big), _full_spec(b1rep),
            _full_spec(w2big), _full_spec(b2),
            _full_spec(w3flat), _full_spec(b3),
            _full_spec(w3r), _full_spec(w1r),
            _full_spec(wp_pad), _full_spec(bp_pad),
        ],
        out_specs=pl.BlockSpec((mb, out_pad), lambda n: (n, 0)),
        compiler_params=pltpu.CompilerParams(dimension_semantics=("parallel",)),
    )(x0, masks, w1big, b1rep, w2big, b2, w3flat, b3, w3r, w1r, wp_pad, bp_pad)

    out = out.reshape(N, Ho, Wo, out_pad)[..., :2 * latent_dim]
    return out[..., :latent_dim], out[..., latent_dim:]


# --------------------------- pure-JAX reference ----------------------------- #
def _ref_conv(x, w, b, stride, pad):
    y = lax.conv_general_dilated(
        x, w, (stride, stride), [(pad, pad), (pad, pad)],
        dimension_numbers=('NHWC', 'HWIO', 'NHWC'))
    return y if b is None else y + b


def encoder_ref(params, x):
    x = jax.nn.relu(_ref_conv(x, params['w1'], params['b1'], 2, 1))
    x = jax.nn.relu(_ref_conv(x, params['w2'], params['b2'], 2, 1))
    x = _ref_conv(x, params['w3'], params['b3'], 1, 1)
    for (w3, w1) in params['res']:
        h = _ref_conv(jax.nn.relu(x), w3, None, 1, 1)
        h = _ref_conv(jax.nn.relu(h), w1, None, 1, 0)
        x = x + h
    x = jax.nn.relu(x)
    x = _ref_conv(x, params['wp'], params['bp'], 1, 0)
    latent = params['wp'].shape[-1] // 2
    return x[..., :latent], x[..., latent:]


# --------------------------------- setup ------------------------------------ #
def init_params(key, num_hiddens, num_residual_layers, num_residual_hiddens,
                latent_dim):
    ks = iter(jax.random.split(key, 8 + 2 * num_residual_layers))
    nh2 = num_hiddens // 2

    def w(k, shape):
        return 0.1 * jax.random.normal(k, shape, jnp.float32)

    params = {
        'w1': w(next(ks), (4, 4, 1, nh2)),            'b1': w(next(ks), (nh2,)),
        'w2': w(next(ks), (4, 4, nh2, num_hiddens)),  'b2': w(next(ks), (num_hiddens,)),
        'w3': w(next(ks), (3, 3, num_hiddens, num_hiddens)),
        'b3': w(next(ks), (num_hiddens,)),
        'wp': w(next(ks), (1, 1, num_hiddens, 2 * latent_dim)),
        'bp': w(next(ks), (2 * latent_dim,)),
        'res': [],
    }
    for _ in range(num_residual_layers):
        w3 = w(next(ks), (3, 3, num_hiddens, num_residual_hiddens))   # bias=False
        w1 = w(next(ks), (1, 1, num_residual_hiddens, num_hiddens))   # bias=False
        params['res'].append((w3, w1))
    return params


if __name__ == "__main__":
    num_hiddens, num_residual_layers, num_residual_hiddens, latent_dim = 32, 2, 16, 8

    key = jax.random.PRNGKey(0)
    kp, kx = jax.random.split(key)
    params = init_params(kp, num_hiddens, num_residual_layers,
                         num_residual_hiddens, latent_dim)

    # PyTorch input would be NCHW (2, 1, 16, 16); we use NHWC (2, 16, 16, 1).
    N, H, W = 2, 16, 16
    x = jax.random.normal(kx, (N, H, W, 1), jnp.float32)

    use_hw_roll, roll_sign = _probe_row_roll()
    packed = pack_params(params, compute_dtype=jnp.bfloat16)
    fwd = jax.jit(functools.partial(
        encoder_forward, latent_dim=latent_dim, compute_dtype=jnp.bfloat16,
        use_hw_roll=use_hw_roll, roll_sign=roll_sign))

    mean, logvar = fwd(packed, x)
    jax.block_until_ready((mean, logvar))

    # Sanity-check against a pure-JAX (f32 XLA conv) reference.  bf16 matmul
    # operands (f32 accumulation) -> loosened tolerance.
    rmean, rlogvar = encoder_ref(params, x)
    assert mean.shape == (N, H // 4, W // 4, latent_dim)
    assert logvar.shape == (N, H // 4, W // 4, latent_dim)
    assert jnp.allclose(mean, rmean, atol=5e-2, rtol=5e-2), \
        float(jnp.max(jnp.abs(mean - rmean)))
    assert jnp.allclose(logvar, rlogvar, atol=5e-2, rtol=5e-2), \
        float(jnp.max(jnp.abs(logvar - rlogvar)))

    print("KERNEL_OK")
</pallas_src>

<mosaic_0001>
module attributes {stable_mosaic.version = 11 : i64} {
  func.func @k(%arg0: memref<16x128xf32, #tpu.memory_space<vmem>>, %arg1: memref<16x128xf32, #tpu.memory_space<vmem>>) attributes {dimension_semantics = [], scalar_prefetch = 0 : i64, scratch_operands = 0 : i64, tpu.core_type = #tpu.core_type<tc>} {
    %c0 = arith.constant 0 : index
    %c0_0 = arith.constant 0 : index
    %0 = vector.load %arg0[%c0, %c0_0] : memref<16x128xf32, #tpu.memory_space<vmem>>, vector<16x128xf32>
    %c1_i32 = arith.constant 1 : i32
    %1 = tpu.dynamic_rotate %0 by %c1_i32 dim 0 : vector<16x128xf32>, i32 -> vector<16x128xf32>
    %c0_1 = arith.constant 0 : index
    %c0_2 = arith.constant 0 : index
    %2 = vector.load %arg1[%c0_1, %c0_2] : memref<16x128xf32, #tpu.memory_space<vmem>>, vector<16x128xf32>
    tpu.vector_store %arg1[%c0_1, %c0_2], %1 {strides = array<i32>} : memref<16x128xf32, #tpu.memory_space<vmem>>, vector<16x128xf32>,
    return
  }
}

module attributes {stable_mosaic.version = 11 : i64} {
  func.func @_encoder_kernel(%arg0: i32, %arg1: memref<16x16xf32, #tpu.memory_space<vmem>>, %arg2: memref<9x16x1xf32, #tpu.memory_space<vmem>>, %arg3: memref<144x64xbf16, #tpu.memory_space<vmem>>, %arg4: memref<1x64xf32, #tpu.memory_space<vmem>>, %arg5: memref<576x32xbf16, #tpu.memory_space<vmem>>, %arg6: memref<1x32xf32, #tpu.memory_space<vmem>>, %arg7: memref<288x32xbf16, #tpu.memory_space<vmem>>, %arg8: memref<1x32xf32, #tpu.memory_space<vmem>>, %arg9: memref<2x288x16xbf16, #tpu.memory_space<vmem>>, %arg10: memref<2x16x32xbf16, #tpu.memory_space<vmem>>, %arg11: memref<32x128xbf16, #tpu.memory_space<vmem>>, %arg12: memref<1x128xf32, #tpu.memory_space<vmem>>, %arg13: memref<16x128xf32, #tpu.memory_space<vmem>>) attributes {dimension_semantics = [#tpu.dimension_semantics<parallel>], iteration_bounds = array<i64: 2>, scalar_prefetch = 0 : i64, scratch_operands = 0 : i64, tpu.core_type = #tpu.core_type<tc>, window_params = [{transform_indices = @transform_0, window_bounds = array<i64: 16, 16>}, {pipeline_mode = #tpu.pipeline_mode<synchronous>, transform_indices = @transform_1, window_bounds = array<i64: 9, 16, 1>}, {pipeline_mode = #tpu.pipeline_mode<synchronous>, transform_indices = @transform_2, window_bounds = array<i64: 144, 64>}, {pipeline_mode = #tpu.pipeline_mode<synchronous>, transform_indices = @transform_3, window_bounds = array<i64: 1, 64>}, {pipeline_mode = #tpu.pipeline_mode<synchronous>, transform_indices = @transform_4, window_bounds = array<i64: 576, 32>}, {pipeline_mode = #tpu.pipeline_mode<synchronous>, transform_indices = @transform_5, window_bounds = array<i64: 1, 32>}, {pipeline_mode = #tpu.pipeline_mode<synchronous>, transform_indices = @transform_6, window_bounds = array<i64: 288, 32>}, {pipeline_mode = #tpu.pipeline_mode<synchronous>, transform_indices = @transform_7, window_bounds = array<i64: 1, 32>}, {pipeline_mode = #tpu.pipeline_mode<synchronous>, transform_indices = @transform_8, window_bounds = array<i64: 2, 288, 16>}, {pipeline_mode = #tpu.pipeline_mode<synchronous>, transform_indices = @transform_9, window_bounds = array<i64: 2, 16, 32>}, {pipeline_mode = #tpu.pipeline_mode<synchronous>, transform_indices = @transform_10, window_bounds = array<i64: 32, 128>}, {pipeline_mode = #tpu.pipeline_mode<synchronous>, transform_indices = @transform_11, window_bounds = array<i64: 1, 128>}, {transform_indices = @transform_12, window_bounds = array<i64: 16, 128>}]} {
    %c0 = arith.constant 0 : index
    %c0_0 = arith.constant 0 : index
    %c0_1 = arith.constant 0 : index
    %0 = vector.load %arg2[%c0, %c0_0, %c0_1] : memref<9x16x1xf32, #tpu.memory_space<vmem>>, vector<9x16x1xf32>
    %c0_2 = arith.constant 0 : index
    %c0_3 = arith.constant 0 : index
    %1 = vector.load %arg1[%c0_2, %c0_3] : memref<16x16xf32, #tpu.memory_space<vmem>>, vector<16x16xf32>
    %c0_4 = arith.constant 0 : index
    %c0_5 = arith.constant 0 : index
    %2 = vector.load %arg3[%c0_4, %c0_5] : memref<144x64xbf16, #tpu.memory_space<vmem>>, vector<144x64xbf16>
    %3 = vector.extract_strided_slice %1 {offsets = [11, 0], sizes = [5, 16], strides = [1, 1]} : vector<16x16xf32> to vector<5x16xf32>
    %4 = vector.extract_strided_slice %1 {offsets = [0, 0], sizes = [11, 16], strides = [1, 1]} : vector<16x16xf32> to vector<11x16xf32>
    %5 = tpu.concatenate %3, %4 in 0 : vector<5x16xf32>, vector<11x16xf32> -> vector<16x16xf32>
    %6 = vector.extract_strided_slice %0 {offsets = [0, 0, 0], sizes = [1, 16, 1], strides = [1, 1, 1]} : vector<9x16x1xf32> to vector<1x16x1xf32>
    %7 = vector.shape_cast %6 : vector<1x16x1xf32> to vector<16x1xf32>
    %8 = vector.broadcast %7 : vector<16x1xf32> to vector<16x16xf32>
    %9 = arith.mulf %5, %8 : vector<16x16xf32>
    %10 = vector.extract_strided_slice %1 {offsets = [12, 0], sizes = [4, 16], strides = [1, 1]} : vector<16x16xf32> to vector<4x16xf32>
    %11 = vector.extract_strided_slice %1 {offsets = [0, 0], sizes = [12, 16], strides = [1, 1]} : vector<16x16xf32> to vector<12x16xf32>
    %12 = tpu.concatenate %10, %11 in 0 : vector<4x16xf32>, vector<12x16xf32> -> vector<16x16xf32>
    %13 = vector.extract_strided_slice %0 {offsets = [1, 0, 0], sizes = [1, 16, 1], strides = [1, 1, 1]} : vector<9x16x1xf32> to vector<1x16x1xf32>
    %14 = vector.shape_cast %13 : vector<1x16x1xf32> to vector<16x1xf32>
    %15 = vector.broadcast %14 : vector<16x1xf32> to vector<16x16xf32>
    %16 = arith.mulf %12, %15 : vector<16x16xf32>
    %17 = vector.extract_strided_slice %1 {offsets = [13, 0], sizes = [3, 16], strides = [1, 1]} : vector<16x16xf32> to vector<3x16xf32>
    %18 = vector.extract_strided_slice %1 {offsets = [0, 0], sizes = [13, 16], strides = [1, 1]} : vector<16x16xf32> to vector<13x16xf32>
    %19 = tpu.concatenate %17, %18 in 0 : vector<3x16xf32>, vector<13x16xf32> -> vector<16x16xf32>
    %20 = vector.extract_strided_slice %0 {offsets = [2, 0, 0], sizes = [1, 16, 1], strides = [1, 1, 1]} : vector<9x16x1xf32> to vector<1x16x1xf32>
    %21 = vector.shape_cast %20 : vector<1x16x1xf32> to vector<16x1xf32>
    %22 = vector.broadcast %21 : vector<16x1xf32> to vector<16x16xf32>
    %23 = arith.mulf %19, %22 : vector<16x16xf32>
    %24 = vector.extract_strided_slice %1 {offsets = [15, 0], sizes = [1, 16], strides = [1, 1]} : vector<16x16xf32> to vector<1x16xf32>
    %25 = vector.extract_strided_slice %1 {offsets = [0, 0], sizes = [15, 16], strides = [1, 1]} : vector<16x16xf32> to vector<15x16xf32>
    %26 = tpu.concatenate %24, %25 in 0 : vector<1x16xf32>, vector<15x16xf32> -> vector<16x16xf32>
    %27 = vector.extract_strided_slice %0 {offsets = [3, 0, 0], sizes = [1, 16, 1], strides = [1, 1, 1]} : vector<9x16x1xf32> to vector<1x16x1xf32>
    %28 = vector.shape_cast %27 : vector<1x16x1xf32> to vector<16x1xf32>
    %29 = vector.broadcast %28 : vector<16x1xf32> to vector<16x16xf32>
    %30 = arith.mulf %26, %29 : vector<16x16xf32>
    %31 = vector.extract_strided_slice %1 {offsets = [1, 0], sizes = [15, 16], strides = [1, 1]} : vector<16x16xf32> to vector<15x16xf32>
    %32 = vector.extract_strided_slice %1 {offsets = [0, 0], sizes = [1, 16], strides = [1, 1]} : vector<16x16xf32> to vector<1x16xf32>
    %33 = tpu.concatenate %31, %32 in 0 : vector<15x16xf32>, vector<1x16xf32> -> vector<16x16xf32>
    %34 = vector.extract_strided_slice %0 {offsets = [5, 0, 0], sizes = [1, 16, 1], strides = [1, 1, 1]} : vector<9x16x1xf32> to vector<1x16x1xf32>
    %35 = vector.shape_cast %34 : vector<1x16x1xf32> to vector<16x1xf32>
    %36 = vector.broadcast %35 : vector<16x1xf32> to vector<16x16xf32>
    %37 = arith.mulf %33, %36 : vector<16x16xf32>
    %38 = vector.extract_strided_slice %1 {offsets = [3, 0], sizes = [13, 16], strides = [1, 1]} : vector<16x16xf32> to vector<13x16xf32>
    %39 = vector.extract_strided_slice %1 {offsets = [0, 0], sizes = [3, 16], strides = [1, 1]} : vector<16x16xf32> to vector<3x16xf32>
    %40 = tpu.concatenate %38, %39 in 0 : vector<13x16xf32>, vector<3x16xf32> -> vector<16x16xf32>
    %41 = vector.extract_strided_slice %0 {offsets = [6, 0, 0], sizes = [1, 16, 1], strides = [1, 1, 1]} : vector<9x16x1xf32> to vector<1x16x1xf32>
    %42 = vector.shape_cast %41 : vector<1x16x1xf32> to vector<16x1xf32>
    %43 = vector.broadcast %42 : vector<16x1xf32> to vector<16x16xf32>
    %44 = arith.mulf %40, %43 : vector<16x16xf32>
    %45 = vector.extract_strided_slice %1 {offsets = [4, 0], sizes = [12, 16], strides = [1, 1]} : vector<16x16xf32> to vector<12x16xf32>
    %46 = vector.extract_strided_slice %1 {offsets = [0, 0], sizes = [4, 16], strides = [1, 1]} : vector<16x16xf32> to vector<4x16xf32>
    %47 = tpu.concatenate %45, %46 in 0 : vector<12x16xf32>, vector<4x16xf32> -> vector<16x16xf32>
    %48 = vector.extract_strided_slice %0 {offsets = [7, 0, 0], sizes = [1, 16, 1], strides = [1, 1, 1]} : vector<9x16x1xf32> to vector<1x16x1xf32>
    %49 = vector.shape_cast %48 : vector<1x16x1xf32> to vector<16x1xf32>
    %50 = vector.broadcast %49 : vector<16x1xf32> to vector<16x16xf32>
    %51 = arith.mulf %47, %50 : vector<16x16xf32>
    %52 = vector.extract_strided_slice %1 {offsets = [5, 0], sizes = [11, 16], strides = [1, 1]} : vector<16x16xf32> to vector<11x16xf32>
    %53 = vector.extract_strided_slice %1 {offsets = [0, 0], sizes = [5, 16], strides = [1, 1]} : vector<16x16xf32> to vector<5x16xf32>
    %54 = tpu.concatenate %52, %53 in 0 : vector<11x16xf32>, vector<5x16xf32> -> vector<16x16xf32>
    %55 = vector.extract_strided_slice %0 {offsets = [8, 0, 0], sizes = [1, 16, 1], strides = [1, 1, 1]} : vector<9x16x1xf32> to vector<1x16x1xf32>
    %56 = vector.shape_cast %55 : vector<1x16x1xf32> to vector<16x1xf32>
    %57 = vector.broadcast %56 : vector<16x1xf32> to vector<16x16xf32>
    %58 = arith.mulf %54, %57 : vector<16x16xf32>
    %59 = tpu.concatenate %9, %16, %23, %30, %1, %37, %44, %51, %58 in 1 : vector<16x16xf32>, vector<16x16xf32>, vector<16x16xf32>, vector<16x16xf32>, vector<16x16xf32>, vector<16x16xf32>, vector<16x16xf32>, vector<16x16xf32>, vector<16x16xf32> -> vector<16x144xf32>
    %60 = arith.truncf %59 : vector<16x144xf32> to vector<16x144xbf16>
    %cst = arith.constant dense<0.000000e+00> : vector<16x64xf32>
    %61 = tpu.matmul %60, %2, %cst {dimension_numbers = #tpu.dot_dimension_numbers<[1], [0], [0], [1], [0, 0, 1, 1], [], []>} : vector<16x144xbf16>, vector<144x64xbf16>, vector<16x64xf32> -> vector<16x64xf32>
    %c0_6 = arith.constant 0 : index
    %c0_7 = arith.constant 0 : index
    %62 = vector.load %arg4[%c0_6, %c0_7] : memref<1x64xf32, #tpu.memory_space<vmem>>, vector<1x64xf32>
    %63 = vector.broadcast %62 : vector<1x64xf32> to vector<16x64xf32>
    %64 = arith.addf %61, %63 : vector<16x64xf32>
    %cst_8 = arith.constant 0.000000e+00 : f32
    %65 = vector.broadcast %cst_8 : f32 to vector<16x64xf32>
    %66 = arith.maximumf %64, %65 : vector<16x64xf32>
    %c0_9 = arith.constant 0 : index
    %c0_10 = arith.constant 0 : index
    %67 = vector.load %arg5[%c0_9, %c0_10] : memref<576x32xbf16, #tpu.memory_space<vmem>>, vector<576x32xbf16>
    %68 = vector.extract_strided_slice %66 {offsets = [11, 0], sizes = [5, 64], strides = [1, 1]} : vector<16x64xf32> to vector<5x64xf32>
    %69 = vector.extract_strided_slice %66 {offsets = [0, 0], sizes = [11, 64], strides = [1, 1]} : vector<16x64xf32> to vector<11x64xf32>
    %70 = tpu.concatenate %68, %69 in 0 : vector<5x64xf32>, vector<11x64xf32> -> vector<16x64xf32>
    %71 = vector.extract_strided_slice %0 {offsets = [0, 0, 0], sizes = [1, 16, 1], strides = [1, 1, 1]} : vector<9x16x1xf32> to vector<1x16x1xf32>
    %72 = vector.shape_cast %71 : vector<1x16x1xf32> to vector<16x1xf32>
    %73 = vector.broadcast %72 : vector<16x1xf32> to vector<16x64xf32>
    %74 = arith.mulf %70, %73 : vector<16x64xf32>
    %75 = vector.extract_strided_slice %66 {offsets = [12, 0], sizes = [4, 64], strides = [1, 1]} : vector<16x64xf32> to vector<4x64xf32>
    %76 = vector.extract_strided_slice %66 {offsets = [0, 0], sizes = [12, 64], strides = [1, 1]} : vector<16x64xf32> to vector<12x64xf32>
    %77 = tpu.concatenate %75, %76 in 0 : vector<4x64xf32>, vector<12x64xf32> -> vector<16x64xf32>
    %78 = vector.extract_strided_slice %0 {offsets = [1, 0, 0], sizes = [1, 16, 1], strides = [1, 1, 1]} : vector<9x16x1xf32> to vector<1x16x1xf32>
    %79 = vector.shape_cast %78 : vector<1x16x1xf32> to vector<16x1xf32>
    %80 = vector.broadcast %79 : vector<16x1xf32> to vector<16x64xf32>
    %81 = arith.mulf %77, %80 : vector<16x64xf32>
    %82 = vector.extract_strided_slice %66 {offsets = [13, 0], sizes = [3, 64], strides = [1, 1]} : vector<16x64xf32> to vector<3x64xf32>
    %83 = vector.extract_strided_slice %66 {offsets = [0, 0], sizes = [13, 64], strides = [1, 1]} : vector<16x64xf32> to vector<13x64xf32>
    %84 = tpu.concatenate %82, %83 in 0 : vector<3x64xf32>, vector<13x64xf32> -> vector<16x64xf32>
    %85 = vector.extract_strided_slice %0 {offsets = [2, 0, 0], sizes = [1, 16, 1], strides = [1, 1, 1]} : vector<9x16x1xf32> to vector<1x16x1xf32>
    %86 = vector.shape_cast %85 : vector<1x16x1xf32> to vector<16x1xf32>
    %87 = vector.broadcast %86 : vector<16x1xf32> to vector<16x64xf32>
    %88 = arith.mulf %84, %87 : vector<16x64xf32>
    %89 = vector.extract_strided_slice %66 {offsets = [15, 0], sizes = [1, 64], strides = [1, 1]} : vector<16x64xf32> to vector<1x64xf32>
    %90 = vector.extract_strided_slice %66 {offsets = [0, 0], sizes = [15, 64], strides = [1, 1]} : vector<16x64xf32> to vector<15x64xf32>
    %91 = tpu.concatenate %89, %90 in 0 : vector<1x64xf32>, vector<15x64xf32> -> vector<16x64xf32>
    %92 = vector.extract_strided_slice %0 {offsets = [3, 0, 0], sizes = [1, 16, 1], strides = [1, 1, 1]} : vector<9x16x1xf32> to vector<1x16x1xf32>
    %93 = vector.shape_cast %92 : vector<1x16x1xf32> to vector<16x1xf32>
    %94 = vector.broadcast %93 : vector<16x1xf32> to vector<16x64xf32>
    %95 = arith.mulf %91, %94 : vector<16x64xf32>
    %96 = vector.extract_strided_slice %66 {offsets = [1, 0], sizes = [15, 64], strides = [1, 1]} : vector<16x64xf32> to vector<15x64xf32>
    %97 = vector.extract_strided_slice %66 {offsets = [0, 0], sizes = [1, 64], strides = [1, 1]} : vector<16x64xf32> to vector<1x64xf32>
    %98 = tpu.concatenate %96, %97 in 0 : vector<15x64xf32>, vector<1x64xf32> -> vector<16x64xf32>
    %99 = vector.extract_strided_slice %0 {offsets = [5, 0, 0], sizes = [1, 16, 1], strides = [1, 1, 1]} : vector<9x16x1xf32> to vector<1x16x1xf32>
    %100 = vector.shape_cast %99 : vector<1x16x1xf32> to vector<16x1xf32>
    %101 = vector.broadcast %100 : vector<16x1xf32> to vector<16x64xf32>
    %102 = arith.mulf %98, %101 : vector<16x64xf32>
    %103 = vector.extract_strided_slice %66 {offsets = [3, 0], sizes = [13, 64], strides = [1, 1]} : vector<16x64xf32> to vector<13x64xf32>
    %104 = vector.extract_strided_slice %66 {offsets = [0, 0], sizes = [3, 64], strides = [1, 1]} : vector<16x64xf32> to vector<3x64xf32>
    %105 = tpu.concatenate %103, %104 in 0 : vector<13x64xf32>, vector<3x64xf32> -> vector<16x64xf32>
    %106 = vector.extract_strided_slice %0 {offsets = [6, 0, 0], sizes = [1, 16, 1], strides = [1, 1, 1]} : vector<9x16x1xf32> to vector<1x16x1xf32>
    %107 = vector.shape_cast %106 : vector<1x16x1xf32> to vector<16x1xf32>
    %108 = vector.broadcast %107 : vector<16x1xf32> to vector<16x64xf32>
    %109 = arith.mulf %105, %108 : vector<16x64xf32>
    %110 = vector.extract_strided_slice %66 {offsets = [4, 0], sizes = [12, 64], strides = [1, 1]} : vector<16x64xf32> to vector<12x64xf32>
    %111 = vector.extract_strided_slice %66 {offsets = [0, 0], sizes = [4, 64], strides = [1, 1]} : vector<16x64xf32> to vector<4x64xf32>
    %112 = tpu.concatenate %110, %111 in 0 : vector<12x64xf32>, vector<4x64xf32> -> vector<16x64xf32>
    %113 = vector.extract_strided_slice %0 {offsets = [7, 0, 0], sizes = [1, 16, 1], strides = [1, 1, 1]} : vector<9x16x1xf32> to vector<1x16x1xf32>
    %114 = vector.shape_cast %113 : vector<1x16x1xf32> to vector<16x1xf32>
    %115 = vector.broadcast %114 : vector<16x1xf32> to vector<16x64xf32>
    %116 = arith.mulf %112, %115 : vector<16x64xf32>
    %117 = vector.extract_strided_slice %66 {offsets = [5, 0], sizes = [11, 64], strides = [1, 1]} : vector<16x64xf32> to vector<11x64xf32>
    %118 = vector.extract_strided_slice %66 {offsets = [0, 0], sizes = [5, 64], strides = [1, 1]} : vector<16x64xf32> to vector<5x64xf32>
    %119 = tpu.concatenate %117, %118 in 0 : vector<11x64xf32>, vector<5x64xf32> -> vector<16x64xf32>
    %120 = vector.extract_strided_slice %0 {offsets = [8, 0, 0], sizes = [1, 16, 1], strides = [1, 1, 1]} : vector<9x16x1xf32> to vector<1x16x1xf32>
    %121 = vector.shape_cast %120 : vector<1x16x1xf32> to vector<16x1xf32>
    %122 = vector.broadcast %121 : vector<16x1xf32> to vector<16x64xf32>
    %123 = arith.mulf %119, %122 : vector<16x64xf32>
    %124 = tpu.concatenate %74, %81, %88, %95, %66, %102, %109, %116, %123 in 1 : vector<16x64xf32>, vector<16x64xf32>, vector<16x64xf32>, vector<16x64xf32>, vector<16x64xf32>, vector<16x64xf32>, vector<16x64xf32>, vector<16x64xf32>, vector<16x64xf32> -> vector<16x576xf32>
    %125 = arith.truncf %124 : vector<16x576xf32> to vector<16x576xbf16>
    %cst_11 = arith.constant dense<0.000000e+00> : vector<16x32xf32>
    %126 = tpu.matmul %125, %67, %cst_11 {dimension_numbers = #tpu.dot_dimension_numbers<[1], [0], [0], [1], [0, 0, 1, 1], [], []>} : vector<16x576xbf16>, vector<576x32xbf16>, vector<16x32xf32> -> vector<16x32xf32>
    %c0_12 = arith.constant 0 : index
    %c0_13 = arith.constant 0 : index
    %127 = vector.load %arg6[%c0_12, %c0_13] : memref<1x32xf32, #tpu.memory_space<vmem>>, vector<1x32xf32>
    %128 = vector.broadcast %127 : vector<1x32xf32> to vector<16x32xf32>
    %129 = arith.addf %126, %128 : vector<16x32xf32>
    %cst_14 = arith.constant 0.000000e+00 : f32
    %130 = vector.broadcast %cst_14 : f32 to vector<16x32xf32>
    %131 = arith.maximumf %129, %130 : vector<16x32xf32>
    %c0_15 = arith.constant 0 : index
    %c0_16 = arith.constant 0 : index
    %132 = vector.load %arg7[%c0_15, %c0_16] : memref<288x32xbf16, #tpu.memory_space<vmem>>, vector<288x32xbf16>
    %133 = vector.extract_strided_slice %131 {offsets = [11, 0], sizes = [5, 32], strides = [1, 1]} : vector<16x32xf32> to vector<5x32xf32>
    %134 = vector.extract_strided_slice %131 {offsets = [0, 0], sizes = [11, 32], strides = [1, 1]} : vector<16x32xf32> to vector<11x32xf32>
    %135 = tpu.concatenate %133, %134 in 0 : vector<5x32xf32>, vector<11x32xf32> -> vector<16x32xf32>
    %136 = vector.extract_strided_slice %0 {offsets = [0, 0, 0], sizes = [1, 16, 1], strides = [1, 1, 1]} : vector<9x16x1xf32> to vector<1x16x1xf32>
    %137 = vector.shape_cast %136 : vector<1x16x1xf32> to vector<16x1xf32>
    %138 = vector.broadcast %137 : vector<16x1xf32> to vector<16x32xf32>
    %139 = arith.mulf %135, %138 : vector<16x32xf32>
    %140 = vector.extract_strided_slice %131 {offsets = [12, 0], sizes = [4, 32], strides = [1, 1]} : vector<16x32xf32> to vector<4x32xf32>
    %141 = vector.extract_strided_slice %131 {offsets = [0, 0], sizes = [12, 32], strides = [1, 1]} : vector<16x32xf32> to vector<12x32xf32>
    %142 = tpu.concatenate %140, %141 in 0 : vector<4x32xf32>, vector<12x32xf32> -> vector<16x32xf32>
    %143 = vector.extract_strided_slice %0 {offsets = [1, 0, 0], sizes = [1, 16, 1], strides = [1, 1, 1]} : vector<9x16x1xf32> to vector<1x16x1xf32>
    %144 = vector.shape_cast %143 : vector<1x16x1xf32> to vector<16x1xf32>
    %145 = vector.broadcast %144 : vector<16x1xf32> to vector<16x32xf32>
    %146 = arith.mulf %142, %145 : vector<16x32xf32>
    %147 = vector.extract_strided_slice %131 {offsets = [13, 0], sizes = [3, 32], strides = [1, 1]} : vector<16x32xf32> to vector<3x32xf32>
    %148 = vector.extract_strided_slice %131 {offsets = [0, 0], sizes = [13, 32], strides = [1, 1]} : vector<16x32xf32> to vector<13x32xf32>
    %149 = tpu.concatenate %147, %148 in 0 : vector<3x32xf32>, vector<13x32xf32> -> vector<16x32xf32>
    %150 = vector.extract_strided_slice %0 {offsets = [2, 0, 0], sizes = [1, 16, 1], strides = [1, 1, 1]} : vector<9x16x1xf32> to vector<1x16x1xf32>
    %151 = vector.shape_cast %150 : vector<1x16x1xf32> to vector<16x1xf32>
    %152 = vector.broadcast %151 : vector<16x1xf32> to vector<16x32xf32>
    %153 = arith.mulf %149, %152 : vector<16x32xf32>
    %154 = vector.extract_strided_slice %131 {offsets = [15, 0], sizes = [1, 32], strides = [1, 1]} : vector<16x32xf32> to vector<1x32xf32>
    %155 = vector.extract_strided_slice %131 {offsets = [0, 0], sizes = [15, 32], strides = [1, 1]} : vector<16x32xf32> to vector<15x32xf32>
    %156 = tpu.concatenate %154, %155 in 0 : vector<1x32xf32>, vector<15x32xf32> -> vector<16x32xf32>
    %157 = vector.extract_strided_slice %0 {offsets = [3, 0, 0], sizes = [1, 16, 1], strides = [1, 1, 1]} : vector<9x16x1xf32> to vector<1x16x1xf32>
    %158 = vector.shape_cast %157 : vector<1x16x1xf32> to vector<16x1xf32>
    %159 = vector.broadcast %158 : vector<16x1xf32> to vector<16x32xf32>
    %160 = arith.mulf %156, %159 : vector<16x32xf32>
    %161 = vector.extract_strided_slice %131 {offsets = [1, 0], sizes = [15, 32], strides = [1, 1]} : vector<16x32xf32> to vector<15x32xf32>
    %162 = vector.extract_strided_slice %131 {offsets = [0, 0], sizes = [1, 32], strides = [1, 1]} : vector<16x32xf32> to vector<1x32xf32>
    %163 = tpu.concatenate %161, %162 in 0 : vector<15x32xf32>, vector<1x32xf32> -> vector<16x32xf32>
    %164 = vector.extract_strided_slice %0 {offsets = [5, 0, 0], sizes = [1, 16, 1], strides = [1, 1, 1]} : vector<9x16x1xf32> to vector<1x16x1xf32>
    %165 = vector.shape_cast %164 : vector<1x16x1xf32> to vector<16x1xf32>
    %166 = vector.broadcast %165 : vector<16x1xf32> to vector<16x32xf32>
    %167 = arith.mulf %163, %166 : vector<16x32xf32>
    %168 = vector.extract_strided_slice %131 {offsets = [3, 0], sizes = [13, 32], strides = [1, 1]} : vector<16x32xf32> to vector<13x32xf32>
    %169 = vector.extract_strided_slice %131 {offsets = [0, 0], sizes = [3, 32], strides = [1, 1]} : vector<16x32xf32> to vector<3x32xf32>
    %170 = tpu.concatenate %168, %169 in 0 : vector<13x32xf32>, vector<3x32xf32> -> vector<16x32xf32>
    %171 = vector.extract_strided_slice %0 {offsets = [6, 0, 0], sizes = [1, 16, 1], strides = [1, 1, 1]} : vector<9x16x1xf32> to vector<1x16x1xf32>
    %172 = vector.shape_cast %171 : vector<1x16x1xf32> to vector<16x1xf32>
    %173 = vector.broadcast %172 : vector<16x1xf32> to vector<16x32xf32>
    %174 = arith.mulf %170, %173 : vector<16x32xf32>
    %175 = vector.extract_strided_slice %131 {offsets = [4, 0], sizes = [12, 32], strides = [1, 1]} : vector<16x32xf32> to vector<12x32xf32>
    %176 = vector.extract_strided_slice %131 {offsets = [0, 0], sizes = [4, 32], strides = [1, 1]} : vector<16x32xf32> to vector<4x32xf32>
    %177 = tpu.concatenate %175, %176 in 0 : vector<12x32xf32>, vector<4x32xf32> -> vector<16x32xf32>
    %178 = vector.extract_strided_slice %0 {offsets = [7, 0, 0], sizes = [1, 16, 1], strides = [1, 1, 1]} : vector<9x16x1xf32> to vector<1x16x1xf32>
    %179 = vector.shape_cast %178 : vector<1x16x1xf32> to vector<16x1xf32>
    %180 = vector.broadcast %179 : vector<16x1xf32> to vector<16x32xf32>
    %181 = arith.mulf %177, %180 : vector<16x32xf32>
    %182 = vector.extract_strided_slice %131 {offsets = [5, 0], sizes = [11, 32], strides = [1, 1]} : vector<16x32xf32> to vector<11x32xf32>
    %183 = vector.extract_strided_slice %131 {offsets = [0, 0], sizes = [5, 32], strides = [1, 1]} : vector<16x32xf32> to vector<5x32xf32>
    %184 = tpu.concatenate %182, %183 in 0 : vector<11x32xf32>, vector<5x32xf32> -> vector<16x32xf32>
    %185 = vector.extract_strided_slice %0 {offsets = [8, 0, 0], sizes = [1, 16, 1], strides = [1, 1, 1]} : vector<9x16x1xf32> to vector<1x16x1xf32>
    %186 = vector.shape_cast %185 : vector<1x16x1xf32> to vector<16x1xf32>
    %187 = vector.broadcast %186 : vector<16x1xf32> to vector<16x32xf32>
    %188 = arith.mulf %184, %187 : vector<16x32xf32>
    %189 = tpu.concatenate %139, %146, %153, %160, %131, %167, %174, %181, %188 in 1 : vector<16x32xf32>, vector<16x32xf32>, vector<16x32xf32>, vector<16x32xf32>, vector<16x32xf32>, vector<16x32xf32>, vector<16x32xf32>, vector<16x32xf32>, vector<16x32xf32> -> vector<16x288xf32>
    %190 = arith.truncf %189 : vector<16x288xf32> to vector<16x288xbf16>
    %cst_17 = arith.constant dense<0.000000e+00> : vector<16x32xf32>
    %191 = tpu.matmul %190, %132, %cst_17 {dimension_numbers = #tpu.dot_dimension_numbers<[1], [0], [0], [1], [0, 0, 1, 1], [], []>} : vector<16x288xbf16>, vector<288x32xbf16>, vector<16x32xf32> -> vector<16x32xf32>
    %c0_18 = arith.constant 0 : index
    %c0_19 = arith.constant 0 : index
    %192 = vector.load %arg8[%c0_18, %c0_19] : memref<1x32xf32, #tpu.memory_space<vmem>>, vector<1x32xf32>
    %193 = vector.broadcast %192 : vector<1x32xf32> to vector<16x32xf32>
    %194 = arith.addf %191, %193 : vector<16x32xf32>
    %cst_20 = arith.constant 0.000000e+00 : f32
    %195 = vector.broadcast %cst_20 : f32 to vector<16x32xf32>
    %196 = arith.maximumf %194, %195 : vector<16x32xf32>
    %c0_21 = arith.constant 0 : index
    %c0_22 = arith.constant 0 : index
    %c0_23 = arith.constant 0 : index
    %197 = vector.load %arg9[%c0_21, %c0_22, %c0_23] : memref<2x288x16xbf16, #tpu.memory_space<vmem>>, vector<1x288x16xbf16>
    %198 = vector.shape_cast %197 : vector<1x288x16xbf16> to vector<288x16xbf16>
    %199 = vector.extract_strided_slice %196 {offsets = [11, 0], sizes = [5, 32], strides = [1, 1]} : vector<16x32xf32> to vector<5x32xf32>
    %200 = vector.extract_strided_slice %196 {offsets = [0, 0], sizes = [11, 32], strides = [1, 1]} : vector<16x32xf32> to vector<11x32xf32>
    %201 = tpu.concatenate %199, %200 in 0 : vector<5x32xf32>, vector<11x32xf32> -> vector<16x32xf32>
    %202 = vector.extract_strided_slice %0 {offsets = [0, 0, 0], sizes = [1, 16, 1], strides = [1, 1, 1]} : vector<9x16x1xf32> to vector<1x16x1xf32>
    %203 = vector.shape_cast %202 : vector<1x16x1xf32> to vector<16x1xf32>
    %204 = vector.broadcast %203 : vector<16x1xf32> to vector<16x32xf32>
    %205 = arith.mulf %201, %204 : vector<16x32xf32>
    %206 = vector.extract_strided_slice %196 {offsets = [12, 0], sizes = [4, 32], strides = [1, 1]} : vector<16x32xf32> to vector<4x32xf32>
    %207 = vector.extract_strided_slice %196 {offsets = [0, 0], sizes = [12, 32], strides = [1, 1]} : vector<16x32xf32> to vector<12x32xf32>
    %208 = tpu.concatenate %206, %207 in 0 : vector<4x32xf32>, vector<12x32xf32> -> vector<16x32xf32>
    %209 = vector.extract_strided_slice %0 {offsets = [1, 0, 0], sizes = [1, 16, 1], strides = [1, 1, 1]} : vector<9x16x1xf32> to vector<1x16x1xf32>
    %210 = vector.shape_cast %209 : vector<1x16x1xf32> to vector<16x1xf32>
    %211 = vector.broadcast %210 : vector<16x1xf32> to vector<16x32xf32>
    %212 = arith.mulf %208, %211 : vector<16x32xf32>
    %213 = vector.extract_strided_slice %196 {offsets = [13, 0], sizes = [3, 32], strides = [1, 1]} : vector<16x32xf32> to vector<3x32xf32>
    %214 = vector.extract_strided_slice %196 {offsets = [0, 0], sizes = [13, 32], strides = [1, 1]} : vector<16x32xf32> to vector<13x32xf32>
    %215 = tpu.concatenate %213, %214 in 0 : vector<3x32xf32>, vector<13x32xf32> -> vector<16x32xf32>
    %216 = vector.extract_strided_slice %0 {offsets = [2, 0, 0], sizes = [1, 16, 1], strides = [1, 1, 1]} : vector<9x16x1xf32> to vector<1x16x1xf32>
    %217 = vector.shape_cast %216 : vector<1x16x1xf32> to vector<16x1xf32>
    %218 = vector.broadcast %217 : vector<16x1xf32> to vector<16x32xf32>
    %219 = arith.mulf %215, %218 : vector<16x32xf32>
    %220 = vector.extract_strided_slice %196 {offsets = [15, 0], sizes = [1, 32], strides = [1, 1]} : vector<16x32xf32> to vector<1x32xf32>
    %221 = vector.extract_strided_slice %196 {offsets = [0, 0], sizes = [15, 32], strides = [1, 1]} : vector<16x32xf32> to vector<15x32xf32>
    %222 = tpu.concatenate %220, %221 in 0 : vector<1x32xf32>, vector<15x32xf32> -> vector<16x32xf32>
    %223 = vector.extract_strided_slice %0 {offsets = [3, 0, 0], sizes = [1, 16, 1], strides = [1, 1, 1]} : vector<9x16x1xf32> to vector<1x16x1xf32>
    %224 = vector.shape_cast %223 : vector<1x16x1xf32> to vector<16x1xf32>
    %225 = vector.broadcast %224 : vector<16x1xf32> to vector<16x32xf32>
    %226 = arith.mulf %222, %225 : vector<16x32xf32>
    %227 = vector.extract_strided_slice %196 {offsets = [1, 0], sizes = [15, 32], strides = [1, 1]} : vector<16x32xf32> to vector<15x32xf32>
    %228 = vector.extract_strided_slice %196 {offsets = [0, 0], sizes = [1, 32], strides = [1, 1]} : vector<16x32xf32> to vector<1x32xf32>
    %229 = tpu.concatenate %227, %228 in 0 : vector<15x32xf32>, vector<1x32xf32> -> vector<16x32xf32>
    %230 = vector.extract_strided_slice %0 {offsets = [5, 0, 0], sizes = [1, 16, 1], strides = [1, 1, 1]} : vector<9x16x1xf32> to vector<1x16x1xf32>
    %231 = vector.shape_cast %230 : vector<1x16x1xf32> to vector<16x1xf32>
    %232 = vector.broadcast %231 : vector<16x1xf32> to vector<16x32xf32>
    %233 = arith.mulf %229, %232 : vector<16x32xf32>
    %234 = vector.extract_strided_slice %196 {offsets = [3, 0], sizes = [13, 32], strides = [1, 1]} : vector<16x32xf32> to vector<13x32xf32>
    %235 = vector.extract_strided_slice %196 {offsets = [0, 0], sizes = [3, 32], strides = [1, 1]} : vector<16x32xf32> to vector<3x32xf32>
    %236 = tpu.concatenate %234, %235 in 0 : vector<13x32xf32>, vector<3x32xf32> -> vector<16x32xf32>
    %237 = vector.extract_strided_slice %0 {offsets = [6, 0, 0], sizes = [1, 16, 1], strides = [1, 1, 1]} : vector<9x16x1xf32> to vector<1x16x1xf32>
    %238 = vector.shape_cast %237 : vector<1x16x1xf32> to vector<16x1xf32>
    %239 = vector.broadcast %238 : vector<16x1xf32> to vector<16x32xf32>
    %240 = arith.mulf %236, %239 : vector<16x32xf32>
    %241 = vector.extract_strided_slice %196 {offsets = [4, 0], sizes = [12, 32], strides = [1, 1]} : vector<16x32xf32> to vector<12x32xf32>
    %242 = vector.extract_strided_slice %196 {offsets = [0, 0], sizes = [4, 32], strides = [1, 1]} : vector<16x32xf32> to vector<4x32xf32>
    %243 = tpu.concatenate %241, %242 in 0 : vector<12x32xf32>, vector<4x32xf32> -> vector<16x32xf32>
    %244 = vector.extract_strided_slice %0 {offsets = [7, 0, 0], sizes = [1, 16, 1], strides = [1, 1, 1]} : vector<9x16x1xf32> to vector<1x16x1xf32>
    %245 = vector.shape_cast %244 : vector<1x16x1xf32> to vector<16x1xf32>
    %246 = vector.broadcast %245 : vector<16x1xf32> to vector<16x32xf32>
    %247 = arith.mulf %243, %246 : vector<16x32xf32>
    %248 = vector.extract_strided_slice %196 {offsets = [5, 0], sizes = [11, 32], strides = [1, 1]} : vector<16x32xf32> to vector<11x32xf32>
    %249 = vector.extract_strided_slice %196 {offsets = [0, 0], sizes = [5, 32], strides = [1, 1]} : vector<16x32xf32> to vector<5x32xf32>
    %250 = tpu.concatenate %248, %249 in 0 : vector<11x32xf32>, vector<5x32xf32> -> vector<16x32xf32>
    %251 = vector.extract_strided_slice %0 {offsets = [8, 0, 0], sizes = [1, 16, 1], strides = [1, 1, 1]} : vector<9x16x1xf32> to vector<1x16x1xf32>
    %252 = vector.shape_cast %251 : vector<1x16x1xf32> to vector<16x1xf32>
    %253 = vector.broadcast %252 : vector<16x1xf32> to vector<16x32xf32>
    %254 = arith.mulf %250, %253 : vector<16x32xf32>
    %255 = tpu.concatenate %205, %212, %219, %226, %196, %233, %240, %247, %254 in 1 : vector<16x32xf32>, vector<16x32xf32>, vector<16x32xf32>, vector<16x32xf32>, vector<16x32xf32>, vector<16x32xf32>, vector<16x32xf32>, vector<16x32xf32>, vector<16x32xf32> -> vector<16x288xf32>
    %256 = arith.truncf %255 : vector<16x288xf32> to vector<16x288xbf16>
    %cst_24 = arith.constant dense<0.000000e+00> : vector<16x16xf32>
    %257 = tpu.matmul %256, %198, %cst_24 {dimension_numbers = #tpu.dot_dimension_numbers<[1], [0], [0], [1], [0, 0, 1, 1], [], []>} : vector<16x288xbf16>, vector<288x16xbf16>, vector<16x16xf32> -> vector<16x16xf32>
    %cst_25 = arith.constant 0.000000e+00 : f32
    %258 = vector.broadcast %cst_25 : f32 to vector<16x16xf32>
    %259 = arith.maximumf %257, %258 : vector<16x16xf32>
    %c0_26 = arith.constant 0 : index
    %c0_27 = arith.constant 0 : index
    %c0_28 = arith.constant 0 : index
    %260 = vector.load %arg10[%c0_26, %c0_27, %c0_28] : memref<2x16x32xbf16, #tpu.memory_space<vmem>>, vector<1x16x32xbf16>
    %261 = vector.shape_cast %260 : vector<1x16x32xbf16> to vector<16x32xbf16>
    %262 = arith.truncf %259 : vector<16x16xf32> to vector<16x16xbf16>
    %cst_29 = arith.constant dense<0.000000e+00> : vector<16x32xf32>
    %263 = tpu.matmul %262, %261, %cst_29 {dimension_numbers = #tpu.dot_dimension_numbers<[1], [0], [0], [1], [0, 0, 1, 1], [], []>} : vector<16x16xbf16>, vector<16x32xbf16>, vector<16x32xf32> -> vector<16x32xf32>
    %264 = arith.addf %194, %263 : vector<16x32xf32>
    %cst_30 = arith.constant 0.000000e+00 : f32
    %265 = vector.broadcast %cst_30 : f32 to vector<16x32xf32>
    %266 = arith.maximumf %264, %265 : vector<16x32xf32>
    %c1 = arith.constant 1 : index
    %c0_31 = arith.constant 0 : index
    %c0_32 = arith.constant 0 : index
    %267 = vector.load %arg9[%c1, %c0_31, %c0_32] : memref<2x288x16xbf16, #tpu.memory_space<vmem>>, vector<1x288x16xbf16>
    %268 = vector.shape_cast %267 : vector<1x288x16xbf16> to vector<288x16xbf16>
    %269 = vector.extract_strided_slice %266 {offsets = [11, 0], sizes = [5, 32], strides = [1, 1]} : vector<16x32xf32> to vector<5x32xf32>
    %270 = vector.extract_strided_slice %266 {offsets = [0, 0], sizes = [11, 32], strides = [1, 1]} : vector<16x32xf32> to vector<11x32xf32>
    %271 = tpu.concatenate %269, %270 in 0 : vector<5x32xf32>, vector<11x32xf32> -> vector<16x32xf32>
    %272 = vector.extract_strided_slice %0 {offsets = [0, 0, 0], sizes = [1, 16, 1], strides = [1, 1, 1]} : vector<9x16x1xf32> to vector<1x16x1xf32>
    %273 = vector.shape_cast %272 : vector<1x16x1xf32> to vector<16x1xf32>
    %274 = vector.broadcast %273 : vector<16x1xf32> to vector<16x32xf32>
    %275 = arith.mulf %271, %274 : vector<16x32xf32>
    %276 = vector.extract_strided_slice %266 {offsets = [12, 0], sizes = [4, 32], strides = [1, 1]} : vector<16x32xf32> to vector<4x32xf32>
    %277 = vector.extract_strided_slice %266 {offsets = [0, 0], sizes = [12, 32], strides = [1, 1]} : vector<16x32xf32> to vector<12x32xf32>
    %278 = tpu.concatenate %276, %277 in 0 : vector<4x32xf32>, vector<12x32xf32> -> vector<16x32xf32>
    %279 = vector.extract_strided_slice %0 {offsets = [1, 0, 0], sizes = [1, 16, 1], strides = [1, 1, 1]} : vector<9x16x1xf32> to vector<1x16x1xf32>
    %280 = vector.shape_cast %279 : vector<1x16x1xf32> to vector<16x1xf32>
    %281 = vector.broadcast %280 : vector<16x1xf32> to vector<16x32xf32>
    %282 = arith.mulf %278, %281 : vector<16x32xf32>
    %283 = vector.extract_strided_slice %266 {offsets = [13, 0], sizes = [3, 32], strides = [1, 1]} : vector<16x32xf32> to vector<3x32xf32>
    %284 = vector.extract_strided_slice %266 {offsets = [0, 0], sizes = [13, 32], strides = [1, 1]} : vector<16x32xf32> to vector<13x32xf32>
    %285 = tpu.concatenate %283, %284 in 0 : vector<3x32xf32>, vector<13x32xf32> -> vector<16x32xf32>
    %286 = vector.extract_strided_slice %0 {offsets = [2, 0, 0], sizes = [1, 16, 1], strides = [1, 1, 1]} : vector<9x16x1xf32> to vector<1x16x1xf32>
    %287 = vector.shape_cast %286 : vector<1x16x1xf32> to vector<16x1xf32>
    %288 = vector.broadcast %287 : vector<16x1xf32> to vector<16x32xf32>
    %289 = arith.mulf %285, %288 : vector<16x32xf32>
    %290 = vector.extract_strided_slice %266 {offsets = [15, 0], sizes = [1, 32], strides = [1, 1]} : vector<16x32xf32> to vector<1x32xf32>
    %291 = vector.extract_strided_slice %266 {offsets = [0, 0], sizes = [15, 32], strides = [1, 1]} : vector<16x32xf32> to vector<15x32xf32>
    %292 = tpu.concatenate %290, %291 in 0 : vector<1x32xf32>, vector<15x32xf32> -> vector<16x32xf32>
    %293 = vector.extract_strided_slice %0 {offsets = [3, 0, 0], sizes = [1, 16, 1], strides = [1, 1, 1]} : vector<9x16x1xf32> to vector<1x16x1xf32>
    %294 = vector.shape_cast %293 : vector<1x16x1xf32> to vector<16x1xf32>
    %295 = vector.broadcast %294 : vector<16x1xf32> to vector<16x32xf32>
    %296 = arith.mulf %292, %295 : vector<16x32xf32>
    %297 = vector.extract_strided_slice %266 {offsets = [1, 0], sizes = [15, 32], strides = [1, 1]} : vector<16x32xf32> to vector<15x32xf32>
    %298 = vector.extract_strided_slice %266 {offsets = [0, 0], sizes = [1, 32], strides = [1, 1]} : vector<16x32xf32> to vector<1x32xf32>
    %299 = tpu.concatenate %297, %298 in 0 : vector<15x32xf32>, vector<1x32xf32> -> vector<16x32xf32>
    %300 = vector.extract_strided_slice %0 {offsets = [5, 0, 0], sizes = [1, 16, 1], strides = [1, 1, 1]} : vector<9x16x1xf32> to vector<1x16x1xf32>
    %301 = vector.shape_cast %300 : vector<1x16x1xf32> to vector<16x1xf32>
    %302 = vector.broadcast %301 : vector<16x1xf32> to vector<16x32xf32>
    %303 = arith.mulf %299, %302 : vector<16x32xf32>
    %304 = vector.extract_strided_slice %266 {offsets = [3, 0], sizes = [13, 32], strides = [1, 1]} : vector<16x32xf32> to vector<13x32xf32>
    %305 = vector.extract_strided_slice %266 {offsets = [0, 0], sizes = [3, 32], strides = [1, 1]} : vector<16x32xf32> to vector<3x32xf32>
    %306 = tpu.concatenate %304, %305 in 0 : vector<13x32xf32>, vector<3x32xf32> -> vector<16x32xf32>
    %307 = vector.extract_strided_slice %0 {offsets = [6, 0, 0], sizes = [1, 16, 1], strides = [1, 1, 1]} : vector<9x16x1xf32> to vector<1x16x1xf32>
    %308 = vector.shape_cast %307 : vector<1x16x1xf32> to vector<16x1xf32>
    %309 = vector.broadcast %308 : vector<16x1xf32> to vector<16x32xf32>
    %310 = arith.mulf %306, %309 : vector<16x32xf32>
    %311 = vector.extract_strided_slice %266 {offsets = [4, 0], sizes = [12, 32], strides = [1, 1]} : vector<16x32xf32> to vector<12x32xf32>
    %312 = vector.extract_strided_slice %266 {offsets = [0, 0], sizes = [4, 32], strides = [1, 1]} : vector<16x32xf32> to vector<4x32xf32>
    %313 = tpu.concatenate %311, %312 in 0 : vector<12x32xf32>, vector<4x32xf32> -> vector<16x32xf32>
    %314 = vector.extract_strided_slice %0 {offsets = [7, 0, 0], sizes = [1, 16, 1], strides = [1, 1, 1]} : vector<9x16x1xf32> to vector<1x16x1xf32>
    %315 = vector.shape_cast %314 : vector<1x16x1xf32> to vector<16x1xf32>
    %316 = vector.broadcast %315 : vector<16x1xf32> to vector<16x32xf32>
    %317 = arith.mulf %313, %316 : vector<16x32xf32>
    %318 = vector.extract_strided_slice %266 {offsets = [5, 0], sizes = [11, 32], strides = [1, 1]} : vector<16x32xf32> to vector<11x32xf32>
    %319 = vector.extract_strided_slice %266 {offsets = [0, 0], sizes = [5, 32], strides = [1, 1]} : vector<16x32xf32> to vector<5x32xf32>
    %320 = tpu.concatenate %318, %319 in 0 : vector<11x32xf32>, vector<5x32xf32> -> vector<16x32xf32>
    %321 = vector.extract_strided_slice %0 {offsets = [8, 0, 0], sizes = [1, 16, 1], strides = [1, 1, 1]} : vector<9x16x1xf32> to vector<1x16x1xf32>
    %322 = vector.shape_cast %321 : vector<1x16x1xf32> to vector<16x1xf32>
    %323 = vector.broadcast %322 : vector<16x1xf32> to vector<16x32xf32>
    %324 = arith.mulf %320, %323 : vector<16x32xf32>
    %325 = tpu.concatenate %275, %282, %289, %296, %266, %303, %310, %317, %324 in 1 : vector<16x32xf32>, vector<16x32xf32>, vector<16x32xf32>, vector<16x32xf32>, vector<16x32xf32>, vector<16x32xf32>, vector<16x32xf32>, vector<16x32xf32>, vector<16x32xf32> -> vector<16x288xf32>
    %326 = arith.truncf %325 : vector<16x288xf32> to vector<16x288xbf16>
    %cst_33 = arith.constant dense<0.000000e+00> : vector<16x16xf32>
    %327 = tpu.matmul %326, %268, %cst_33 {dimension_numbers = #tpu.dot_dimension_numbers<[1], [0], [0], [1], [0, 0, 1, 1], [], []>} : vector<16x288xbf16>, vector<288x16xbf16>, vector<16x16xf32> -> vector<16x16xf32>
    %cst_34 = arith.constant 0.000000e+00 : f32
    %328 = vector.broadcast %cst_34 : f32 to vector<16x16xf32>
    %329 = arith.maximumf %327, %328 : vector<16x16xf32>
    %c1_35 = arith.constant 1 : index
    %c0_36 = arith.constant 0 : index
    %c0_37 = arith.constant 0 : index
    %330 = vector.load %arg10[%c1_35, %c0_36, %c0_37] : memref<2x16x32xbf16, #tpu.memory_space<vmem>>, vector<1x16x32xbf16>
    %331 = vector.shape_cast %330 : vector<1x16x32xbf16> to vector<16x32xbf16>
    %332 = arith.truncf %329 : vector<16x16xf32> to vector<16x16xbf16>
    %cst_38 = arith.constant dense<0.000000e+00> : vector<16x32xf32>
    %333 = tpu.matmul %332, %331, %cst_38 {dimension_numbers = #tpu.dot_dimension_numbers<[1], [0], [0], [1], [0, 0, 1, 1], [], []>} : vector<16x16xbf16>, vector<16x32xbf16>, vector<16x32xf32> -> vector<16x32xf32>
    %334 = arith.addf %264, %333 : vector<16x32xf32>
    %cst_39 = arith.constant 0.000000e+00 : f32
    %335 = vector.broadcast %cst_39 : f32 to vector<16x32xf32>
    %336 = arith.maximumf %334, %335 : vector<16x32xf32>
    %c0_40 = arith.constant 0 : index
    %c0_41 = arith.constant 0 : index
    %337 = vector.load %arg11[%c0_40, %c0_41] : memref<32x128xbf16, #tpu.memory_space<vmem>>, vector<32x128xbf16>
    %338 = arith.truncf %336 : vector<16x32xf32> to vector<16x32xbf16>
    %cst_42 = arith.constant dense<0.000000e+00> : vector<16x128xf32>
    %339 = tpu.matmul %338, %337, %cst_42 {dimension_numbers = #tpu.dot_dimension_numbers<[1], [0], [0], [1], [0, 0, 1, 1], [], []>} : vector<16x32xbf16>, vector<32x128xbf16>, vector<16x128xf32> -> vector<16x128xf32>
    %c0_43 = arith.constant 0 : index
    %c0_44 = arith.constant 0 : index
    %340 = vector.load %arg12[%c0_43, %c0_44] : memref<1x128xf32, #tpu.memory_space<vmem>>, vector<1x128xf32>
    %341 = vector.broadcast %340 : vector<1x128xf32> to vector<16x128xf32>
    %342 = arith.addf %339, %341 : vector<16x128xf32>
    %c0_45 = arith.constant 0 : index
    %c0_46 = arith.constant 0 : index
    %343 = vector.load %arg13[%c0_45, %c0_46] : memref<16x128xf32, #tpu.memory_space<vmem>>, vector<16x128xf32>
    tpu.vector_store %arg13[%c0_45, %c0_46], %342 {strides = array<i32>} : memref<16x128xf32, #tpu.memory_space<vmem>>, vector<16x128xf32>,
    return
  }
  func.func @transform_0(%arg0: i32) -> (i32, i32) {
    %c0_i32 = arith.constant 0 : i32
    %c0_i32_0 = arith.constant 0 : i32
    return %arg0, %c0_i32 : i32, i32
  }
  func.func @transform_1(%arg0: i32) -> (i32, i32, i32) {
    %c0_i32 = arith.constant 0 : i32
    %c0_i32_0 = arith.constant 0 : i32
    %c0_i32_1 = arith.constant 0 : i32
    %c0_i32_2 = arith.constant 0 : i32
    return %c0_i32, %c0_i32_0, %c0_i32_1 : i32, i32, i32
  }
  func.func @transform_2(%arg0: i32) -> (i32, i32) {
    %c0_i32 = arith.constant 0 : i32
    %c0_i32_0 = arith.constant 0 : i32
    %c0_i32_1 = arith.constant 0 : i32
    return %c0_i32, %c0_i32_0 : i32, i32
  }
  func.func @transform_3(%arg0: i32) -> (i32, i32) {
    %c0_i32 = arith.constant 0 : i32
    %c0_i32_0 = arith.constant 0 : i32
    %c0_i32_1 = arith.constant 0 : i32
    return %c0_i32, %c0_i32_0 : i32, i32
  }
  func.func @transform_4(%arg0: i32) -> (i32, i32) {
    %c0_i32 = arith.constant 0 : i32
    %c0_i32_0 = arith.constant 0 : i32
    %c0_i32_1 = arith.constant 0 : i32
    return %c0_i32, %c0_i32_0 : i32, i32
  }
  func.func @transform_5(%arg0: i32) -> (i32, i32) {
    %c0_i32 = arith.constant 0 : i32
    %c0_i32_0 = arith.constant 0 : i32
    %c0_i32_1 = arith.constant 0 : i32
    return %c0_i32, %c0_i32_0 : i32, i32
  }
  func.func @transform_6(%arg0: i32) -> (i32, i32) {
    %c0_i32 = arith.constant 0 : i32
    %c0_i32_0 = arith.constant 0 : i32
    %c0_i32_1 = arith.constant 0 : i32
    return %c0_i32, %c0_i32_0 : i32, i32
  }
  func.func @transform_7(%arg0: i32) -> (i32, i32) {
    %c0_i32 = arith.constant 0 : i32
    %c0_i32_0 = arith.constant 0 : i32
    %c0_i32_1 = arith.constant 0 : i32
    return %c0_i32, %c0_i32_0 : i32, i32
  }
  func.func @transform_8(%arg0: i32) -> (i32, i32, i32) {
    %c0_i32 = arith.constant 0 : i32
    %c0_i32_0 = arith.constant 0 : i32
    %c0_i32_1 = arith.constant 0 : i32
    %c0_i32_2 = arith.constant 0 : i32
    return %c0_i32, %c0_i32_0, %c0_i32_1 : i32, i32, i32
  }
  func.func @transform_9(%arg0: i32) -> (i32, i32, i32) {
    %c0_i32 = arith.constant 0 : i32
    %c0_i32_0 = arith.constant 0 : i32
    %c0_i32_1 = arith.constant 0 : i32
    %c0_i32_2 = arith.constant 0 : i32
    return %c0_i32, %c0_i32_0, %c0_i32_1 : i32, i32, i32
  }
  func.func @transform_10(%arg0: i32) -> (i32, i32) {
    %c0_i32 = arith.constant 0 : i32
    %c0_i32_0 = arith.constant 0 : i32
    %c0_i32_1 = arith.constant 0 : i32
    return %c0_i32, %c0_i32_0 : i32, i32
  }
  func.func @transform_11(%arg0: i32) -> (i32, i32) {
    %c0_i32 = arith.constant 0 : i32
    %c0_i32_0 = arith.constant 0 : i32
    %c0_i32_1 = arith.constant 0 : i32
    return %c0_i32, %c0_i32_0 : i32, i32
  }
  func.func @transform_12(%arg0: i32) -> (i32, i32) {
    %c0_i32 = arith.constant 0 : i32
    %c0_i32_0 = arith.constant 0 : i32
    return %arg0, %c0_i32 : i32, i32
  }
}

</mosaic_0001>

<bundles_post_ra>
// kernel: tpu_custom_call.1
= control target key start
LH: loop header
LB: loop body
LE: loop exit
PB: predicated region body
PF: predicated region fallthrough
CT: control target
= control target key end

     0   :  { %6 = vsyncpa [#allocation3], 0  ;;  %s147_s0 = inlined_call_operand.hbm [shape: f32[16,128], index: 0, kind: input, shape index: {}]   ;;  %s148_s1 = inlined_call_operand.hbm [shape: f32[16,128], index: 1, kind: output, shape index: {}]  }
   0x1   :  { %7 = vsyncpa [#allocation4], 0  ;;  %s103_s6 = smov [#allocation2]   ;;  %s55_s10 = scalar_lea.hbm %s147_s0, 256 }
   0x2   :  { %s13_s7 = sshll.u32 %s103_s6, 4  ;;  %p56_p0 = scmp.ne.s32.totalorder %s147_s0, %s55_s10  ;;  %s14_s7 = int_to_ptr.vmem [resolvable:$true] %s13_s7 }
   0x3   :  { %p59_p1 = scmp.lt.u32.totalorder %s55_s10, %s147_s0 }
   0x5   :  { %p61_p2 = pnand %p59_p1, %p56_p0 }
   0x7   :  { %64 = shalt.err (!%p61_p2)
}
   0x8   :  { %s65_s15 = scalar_lea.vmem %s14_s7, 256  ;;  %p70_p4 = scmp.lt.s32.totalorder %s14_s7, %s14_s7 }
   0x9   :  { %p66_p3 = scmp.ne.s32.totalorder %s14_s7, %s65_s15  ;;  %p71_p5 = scmp.lt.s32.totalorder %s65_s15, %s65_s15 }
   0xb   :  { %p72_p6 = por %p71_p5, %p70_p4 }
   0xd   :  { %p73_p7 = pnand %p72_p6, %p66_p3 }
   0xf   :  { %76 = shalt.err (!%p73_p7)
}
  0x10   :  { %s104_s16 = smov 128   ;;  %s105_s17 = smov 8  }
  0x11   :  { %19 = dma.hbm_to_vmem [thread:$0]  %s147_s0, 256, %s14_s7, [#allocation3], %s104_s16, %s104_s16, %s105_s17  }
  0x12   :  { %99 = dma.done.wait [#allocation3], 256  }
  0x13   :  { %100 = vsyncadd [#allocation3], 4294967040  ;;  %v27_v0 = vlaneseq  ;;  %s106_s20 = smov [#allocation5]   ;;  %v23_v2 = vld [vmem:[#allocation2] sm:$0xff]  ;;  %v24_v3 = vld [vmem:[#allocation2 + $0x8] sm:$0xff] }
  0x14   :  { %s39_s21 = sshll.u32 %s106_s20, 4  ;;  %v25_v4 = vrot.slane %v23_v2, 7  ;;  %v26_v5 = vrot.slane %v24_v3, 7  ;;  %s40_s21 = int_to_ptr.vmem [resolvable:$true] %s39_s21 }
  0x15   :  { %v28_v1 = vshrl.u32 %v27_v0, 7  ;;  %s77_s22 = scalar_lea.vmem %s40_s21, 256  ;;  %p82_p9 = scmp.lt.s32.totalorder %s40_s21, %s40_s21 }
  0x16   :  { %p78_p8 = scmp.ne.s32.totalorder %s40_s21, %s77_s22  ;;  %p83_p10 = scmp.lt.s32.totalorder %s77_s22, %s77_s22 }
  0x17   :  { %vm29_vm0 = vcmp.lt.s32.totalorder %v28_v1, 1 }
  0x18   :  { %v31_v6 = vsel %vm29_vm0, %v26_v5, %v25_v4  ;;  %v30_v7 = vsel %vm29_vm0, %v25_v4, %v26_v5  ;;  %p84_p11 = por %p83_p10, %p82_p9 }
  0x19   :  { %32 = vst [vmem:[#allocation5] sm:$0xff] %v31_v6  ;;  %33 = vst [vmem:[#allocation5 + $0x8] sm:$0xff] %v30_v7 }
  0x1a   :  { %p85_p12 = pnand %p84_p11, %p78_p8 }
  0x1c   :  { %88 = shalt.err (!%p85_p12)
}
  0x1d   :  { %s89_s24 = scalar_lea.hbm %s148_s1, 256 }
  0x1e   :  { %p90_p13 = scmp.ne.s32.totalorder %s148_s1, %s89_s24  ;;  %p93_p0 = scmp.lt.u32.totalorder %s89_s24, %s148_s1 }
  0x20   :  { %p95_p1 = pnand %p93_p0, %p90_p13 }
  0x22   :  { %98 = shalt.err (!%p95_p1)
}
  0x23   :  { %45 = dma.vmem_to_hbm [thread:$0]  %s40_s21, 256, %s148_s1, [#allocation4], %s104_s16, %s104_s16, %s105_s17  }
  0x24   :  { %101 = dma.done.wait [#allocation4], 256  }
  0x25   :  { %102 = vsyncadd [#allocation4], 4294967040 }
  0x26   :  { %49 = vsyncpa [#allocation3], 1 }
  0x27   :  { %50 = vsyncpa [#allocation4], 1 }

// kernel: encoder_forward.1
= control target key start
LH: loop header
LB: loop body
LE: loop exit
PB: predicated region body
PF: predicated region fallthrough
CT: control target
= control target key end

     0   :  { %s3289_s21 = smov 0   ;;  %s4084_s0 = inlined_call_operand.vmem [shape: f32[32,16], index: 0, kind: input, shape index: {}]   ;;  %s4085_s1 = inlined_call_operand.vmem [shape: f32[9,16,1], index: 1, kind: input, shape index: {}]   ;;  %s4086_s2 = inlined_call_operand.vmem [shape: bf16[144,64], index: 2, kind: input, shape index: {}]   ;;  %s4087_s3 = inlined_call_operand.vmem [shape: f32[1,64], index: 3, kind: input, shape index: {}]   ;;  %s4088_s4 = inlined_call_operand.vmem [shape: bf16[576,32], index: 4, kind: input, shape index: {}]   ;;  %s4089_s5 = inlined_call_operand.vmem [shape: f32[1,32], index: 5, kind: input, shape index: {}]   ;;  %s4090_s6 = inlined_call_operand.vmem [shape: bf16[288,32], index: 6, kind: input, shape index: {}]   ;;  %s4091_s7 = inlined_call_operand.vmem [shape: f32[1,32], index: 7, kind: input, shape index: {}]   ;;  %s4092_s8 = inlined_call_operand.vmem [shape: bf16[2,288,16], index: 8, kind: input, shape index: {}]   ;;  %s4093_s9 = inlined_call_operand.vmem [shape: bf16[2,16,32], index: 9, kind: input, shape index: {}]   ;;  %s4094_s10 = inlined_call_operand.vmem [shape: bf16[32,128], index: 10, kind: input, shape index: {}]   ;;  %s4095_s11 = inlined_call_operand.vmem [shape: f32[1,128], index: 11, kind: input, shape index: {}]   ;;  %s4096_s12 = inlined_call_operand.vmem [shape: f32[32,128], index: 12, kind: output, shape index: {}]  }
   0x1 LB: > { %s2587_s22 = sadd.s32 4294967295, %s3212_s21   ;;  %p2591_p0 = scmp.ge.s32.totalorder %s3212_s21, 1  ;;  %s3212_s21 = sphi %s3289_s21, %s22_s21  }
   0x2   : > { %p363_p1 = scmp.lt.s32.totalorder %s3212_s21, 3 }
   0x4   : > { %p364_p2 = pnand %p2591_p0, %p363_p1 }
   0x5   : > { %v422_v0 = vld [vmem:[%s4085_s1 + $0x20] sm:$0xff] (!%p364_p2)  ;;  %v420_v1 = vld [vmem:[%s4085_s1 + $0x10] sm:$0xff] (!%p364_p2)  ;;  %s2592_s27 = sshll.u32 (!%p364_p2), %s2587_s22, 1  ;;  %v3214_v2 = vmov (!%p364_p2), 0   ;;  %v423_v3 = vld [vmem:[%s4085_s1 + $0x28] sm:$0xff] (!%p364_p2)  ;;  %vm498_vm0 = vcmask (!%p364_p2), 1042432  }
   0x6   : > { %367 = sbr.rel (%p364_p2) target bundleno = 2617 (0xa39), region = 68  ;;  %2957 = vset.pattern.permute.xlu1 (!%p364_p2), %v3214_v2  ;;  %2956 = vset.pattern.permute.xlu0 (!%p364_p2), %v3214_v2  ;;  %p406_p3 = scmp.lt.s32.totalorder (!%p364_p2), %s2592_s27, 3  ;;  %v421_v4 = vld [vmem:[%s4085_s1 + $0x18] sm:$0xff] (!%p364_p2)  ;;  %v424_v6 = vld [vmem:[%s4085_s1 + $0x30] sm:$0xff] (!%p364_p2)  ;;  %vm478_vm1 = vcmask (!%p364_p2), 1043456   ;;  %vm518_vm2 = vcmask (!%p364_p2), 1040384  }
   0x7   : > { %506 = vperm.xlu1 (!%p364_p2), %2957, %v422_v0   ;;  %486 = vperm.xlu0 (!%p364_p2), %2956, %v420_v1   ;;  %v425_v5 = vld [vmem:[%s4085_s1 + $0x38] sm:$0xff] (!%p364_p2)  ;;  %v426_v13 = vld [vmem:[%s4085_s1 + $0x50] sm:$0xff] (!%p364_p2)  ;;  %vm536_vm3 = vcmask (!%p364_p2), 1046528   ;;  %v429_v25 = vld [vmem:[%s4085_s1 + $0x68] sm:$0xff] (!%p364_p2)  ;;  %vm458_vm4 = vcmask (!%p364_p2), 1044480   ;;  %s3215_s29 = smov (!%p364_p2), 64  }
   0x8   : > { %733 = vmatprep.subr.bf16.mxu0 (!%p364_p2), %v3214_v2  ;;  %v427_v12 = vld [vmem:[%s4085_s1 + $0x58] sm:$0xff] (!%p364_p2)  ;;  %v428_v26 = vld [vmem:[%s4085_s1 + $0x60] sm:$0xff] (!%p364_p2)  ;;  %v430_v32 = vld [vmem:[%s4085_s1 + $0x70] sm:$0xff] (!%p364_p2)  ;;  %s3216_s14 = smov (!%p364_p2), 32   ;;  %s3217_s15 = smov (!%p364_p2), 16   ;;  %vm646_vm5 = vcmask (!%p364_p2), 130048  }
   0x9   : > { %v431_v31 = vld [vmem:[%s4085_s1 + $0x78] sm:$0xff] (!%p364_p2)  ;;  %v419_v35 = vld [vmem:[%s4085_s1 + $0x8] sm:$0xff] (!%p364_p2)  ;;  %v418_v36 = vld [vmem:[%s4085_s1] sm:$0xff] (!%p364_p2)  ;;  %s3218_s19 = smov (!%p364_p2), 48   ;;  %s3219_s20 = smov (!%p364_p2), 80   ;;  %vm649_vm6 = vcmask (!%p364_p2), 261120  }
   0xa   : > { %v433_v37 = vld [vmem:[%s4085_s1 + $0x88] sm:$0xff] (!%p364_p2)  ;;  %v432_v38 = vld [vmem:[%s4085_s1 + $0x80] sm:$0xff] (!%p364_p2)  ;;  %v3105_v42 = vld [vmem:[%s4086_s2 + $0x10] sm:$0xff] (!%p364_p2)   ;;  %s3222_s23 = smov (!%p364_p2), 112   ;;  %vm652_vm7 = vcmask (!%p364_p2), 392192   ;;  %vm655_vm8 = vcmask (!%p364_p2), 523264  }
   0xb   : > { %511 = vperm.xlu1 (!%p364_p2), %2957, %v423_v3   ;;  %491 = vperm.xlu0 (!%p364_p2), %2956, %v421_v4   ;;  %v3103_v40 = vld [vmem:[%s4086_s2] sm:$0xff] (!%p364_p2)   ;;  %v3104_v41 = vld [vmem:[%s4086_s2 + $0x8] sm:$0xff] (!%p364_p2)   ;;  %v3106_v43 = vld [vmem:[%s4086_s2 + $0x18] sm:$0xff] (!%p364_p2)   ;;  %vm658_vm9 = vcmask (!%p364_p2), 654336   ;;  %vm661_vm10 = vcmask (!%p364_p2), 785408   ;;  %vm664_vm11 = vcmask (!%p364_p2), 916480  }
   0xc   : > { %734 = vmatpush1.bf16.msra.mxu0 (!%p364_p2), %v3103_v40  ;;  %v3107_v44 = vld [vmem:[%s4086_s2 + $0x20] sm:$0xff] (!%p364_p2)   ;;  %v3108_v47 = vld [vmem:[%s4086_s2 + $0x28] sm:$0xff] (!%p364_p2)   ;;  %v3109_v50 = vld [vmem:[%s4086_s2 + $0x30] sm:$0xff] (!%p364_p2)   ;;  %vm3223_vm12 = vmmov (!%p364_p2), 0  }
   0xd   : > { %s4098_s27 = smov (!%p406_p3, %s2592_s27), 3  ;;  %735 = vmatprep.subr.bf16.mxu0 %v3214_v2  ;;  %v3110_v59 = vld [vmem:[%s4086_s2 + $0x38] sm:$0xff]   ;;  %v3111_v1 = vld [vmem:[%s4086_s2 + $0x40] sm:$0xff]  }
   0xe   : > { %s2593_s18 = sshll.u32 %s4098_s27, 3 }
   0xf   : > { %s409_s22 = scalar_lea.vmem %s4084_s0, %s2593_s18  ;;  %531 = vperm.xlu1 %2957, %v425_v5   ;;  %526 = vperm.xlu0 %2956, %v424_v6   ;;  %s415_s28 = scalar_lea.vmem %s4096_s12, %s2593_s18 }
  0x10   : > { %v434_v7 = vld [vmem:[%s409_s22] sm:$0xff]  ;;  %v435_v8 = vld [vmem:[%s409_s22 + $0x8] sm:$0xff]  ;;  %736 = vmatpush1.bf16.msra.mxu0 %v3104_v41  ;;  %s3221_s22 = smov 96  }
  0x11   : > { %v496_v9 = vrot.slane %v435_v8, 5  ;;  %v499_v10 = vrot.slane %v434_v7, 5  ;;  %v476_v11 = vrot.slane %v435_v8, 4  ;;  %v479_v14 = vrot.slane %v434_v7, 4  ;;  %737 = vmatprep.subr.bf16.mxu0 %v3214_v2 }
  0x12   : > { %v516_v15 = vrot.slane %v435_v8, 7  ;;  %v519_v16 = vrot.slane %v434_v7, 7  ;;  %v537_v23 = vrot.slane %v434_v7, 1  ;;  %v538_v24 = vrot.slane %v435_v8, 1 }
  0x13   : > { %v3333_v17 = vsel %vm498_vm0, %v499_v10, %v496_v9  ;;  %v3336_v18 = vsel %vm498_vm0, %v496_v9, %v499_v10  ;;  %v3339_v19 = vsel %vm478_vm1, %v479_v14, %v476_v11  ;;  %v3342_v20 = vsel %vm478_vm1, %v476_v11, %v479_v14  ;;  %551 = vperm.xlu1 %2957, %v427_v12  }
  0x14   : > { %v3345_v21 = vsel %vm518_vm2, %v519_v16, %v516_v15  ;;  %v3348_v22 = vsel %vm518_vm2, %v516_v15, %v519_v16  ;;  %546 = vperm.xlu0 %2956, %v426_v13   ;;  %v3357_v27 = vsel %vm536_vm3, %v537_v23, %v538_v24  ;;  %v3360_v28 = vsel %vm536_vm3, %v538_v24, %v537_v23 }
  0x15   : > { %v455_v29 = vrot.slane %v435_v8, 3  ;;  %v459_v30 = vrot.slane %v434_v7, 3  ;;  %v2958_v39 = vpack.i.bf16 %v435_v8, %v434_v7  ;;  %738 = vmatpush1.bf16.msra.mxu0 %v3105_v42  ;;  %v3220_v9 = vmov 0.0  }
  0x16   : > { %739 = vmatprep.subr.bf16.mxu0 %v3214_v2 }
  0x17   : > { %v3369_v33 = vsel %vm458_vm4, %v459_v30, %v455_v29  ;;  %v3372_v34 = vsel %vm458_vm4, %v455_v29, %v459_v30  ;;  %563 = vperm.xlu1 %2957, %v429_v25  }
  0x18   : > { %558 = vperm.xlu0 %2956, %v428_v26  }
  0x19   : > { %740 = vmatpush1.bf16.msra.mxu0 %v3106_v43 }
  0x1a   : > { %741 = vmatprep.subr.bf16.mxu0 %v3214_v2 }
  0x1b   : > { %575 = vperm.xlu1 %2957, %v431_v31  }
  0x1c   : > { %570 = vperm.xlu0 %2956, %v430_v32  }
  0x1d   : > { %742 = vmatpush1.bf16.msra.mxu0 %v3107_v44 }
  0x1e   : > { %743 = vmatprep.subr.bf16.mxu0 %v3214_v2 }
  0x1f   : > { %471 = vperm.xlu1 %2957, %v419_v35  }
  0x20   : > { %466 = vperm.xlu0 %2956, %v418_v36  }
  0x21   : > { %744 = vmatpush1.bf16.msra.mxu0 %v3108_v47 }
  0x22   : > { %745 = vmatprep.subr.bf16.mxu0 %v3214_v2 }
  0x23   : > { %587 = vperm.xlu1 %2957, %v433_v37  }
  0x24   : > { %582 = vperm.xlu0 %2956, %v432_v38  }
  0x25   : > { %746 = vmatpush1.bf16.msra.mxu0 %v3109_v50 }
  0x26   : > { %747 = vmatprep.subr.bf16.mxu0 %v3214_v2 }
  0x27   : > { %2959 = vrot.lane.b32.xlu1 %v2958_v39, %s3215_s29 }
  0x29   : > { %748 = vmatpush1.bf16.msra.mxu0 %v3110_v59 }
  0x2a   : > { %749 = vmatprep.subr.bf16.mxu0 %v3214_v2 }
  0x2d   : > { %750 = vmatpush1.bf16.msra.mxu0 %v3111_v1 }
  0x2e   : > { %2882 = vmatprep.subr.bf16.mxu0 %v3220_v9 }
  0x86   : > { %v3407_v45 = vpop.permute.xlu1 %506  ;;  %v3409_v46 = vpop.permute.xlu0 %486 }
  0x87   : > { %v514_v51 = vmul.f32 %v3407_v45, %v3336_v18  ;;  %v494_v53 = vmul.f32 %v3409_v46, %v3342_v20 }
  0x8a   : > { %v3415_v48 = vpop.permute.xlu1 %511  ;;  %v3417_v49 = vpop.permute.xlu0 %491 }
  0x8b   : > { %v515_v52 = vmul.f32 %v3415_v48, %v3333_v17  ;;  %v495_v54 = vmul.f32 %v3417_v49, %v3339_v19 }
  0x8d   : > { %v2968_v55 = vpack.i.bf16 %v515_v52, %v514_v51  ;;  %v2963_v56 = vpack.i.bf16 %v495_v54, %v494_v53 }
  0x8e   : > { %v3431_v57 = vpop.permute.xlu1 %531  ;;  %v3433_v58 = vpop.permute.xlu0 %526 }
  0x8f   : > { %2969 = vrot.lane.b32.xlu1 %v2968_v55, %s3216_s14  ;;  %2964 = vrot.lane.b32.xlu0 %v2963_v56, %s3217_s15  ;;  %v534_v60 = vmul.f32 %v3433_v58, %v3348_v22  ;;  %v535_v61 = vmul.f32 %v3431_v57, %v3345_v21 }
  0x91   : > { %v2973_v62 = vpack.i.bf16 %v535_v61, %v534_v60 }
  0x92   : > { %v3444_v63 = vpop.permute.xlu1 %551 }
  0x93   : > { %v3446_v0 = vpop.permute.xlu0 %546  ;;  %2974 = vrot.lane.b32.xlu0 %v2973_v62, %s3218_s19  ;;  %v555_v4 = vmul.f32 %v3444_v63, %v3360_v28 }
  0x94   : > { %v554_v3 = vmul.f32 %v3446_v0, %v3357_v27 }
  0x96   : > { %v2978_v5 = vpack.i.bf16 %v555_v4, %v554_v3  ;;  %v3455_v6 = vpop.permute.xlu1 %563 }
  0x97   : > { %v3457_v2 = vpop.permute.xlu0 %558  ;;  %v567_v8 = vmul.f32 %v3455_v6, %v3372_v34 }
  0x98   : > { %2979 = vrot.lane.b32.xlu0 %v2978_v5, %s3219_s20  ;;  %v566_v7 = vmul.f32 %v3457_v2, %v3369_v33  ;;  %v3112_v5 = vld [vmem:[%s4088_s4 + $0x100] sm:$0xff]  }
  0x9a   : > { %v2983_v10 = vpack.i.bf16 %v567_v8, %v566_v7  ;;  %v3464_v11 = vpop.permute.xlu1 %575  ;;  %v3113_v8 = vld [vmem:[%s4088_s4 + $0x108] sm:$0xff]  }
  0x9b   : > { %v3466_v12 = vpop.permute.xlu0 %570  ;;  %v579_v14 = vmul.f32 %v3464_v11, %v3342_v20 }
  0x9c   : > { %2984 = vrot.lane.b32.xlu1 %v2983_v10, %s3221_s22  ;;  %v578_v13 = vmul.f32 %v3466_v12, %v3339_v19  ;;  %v3114_v10 = vld [vmem:[%s4088_s4 + $0x110] sm:$0xff]  }
  0x9e   : > { %v2988_v15 = vpack.i.bf16 %v579_v14, %v578_v13  ;;  %v3473_v16 = vpop.permute.xlu1 %471  ;;  %v3115_v13 = vld [vmem:[%s4088_s4 + $0x118] sm:$0xff]   ;;  %v3116_v14 = vld [vmem:[%s4088_s4 + $0x40] sm:$0xff]  }
  0x9f   : > { %v3475_v21 = vpop.permute.xlu0 %466  ;;  %v475_v31 = vmul.f32 %v3473_v16, %v3369_v33  ;;  %2751 = vmatprep.subr.bf16.mxu1 %v3116_v14 }
  0xa0   : > { %2989 = vrot.lane.b32.xlu0 %v2988_v15, %s3222_s23  ;;  %v474_v32 = vmul.f32 %v3475_v21, %v3372_v34  ;;  %v3117_v15 = vld [vmem:[%s4088_s4] sm:$0xff]  }
  0xa1   : > { %2752 = vmatpush3.bf16.msra.mxu1 %v3117_v15 }
  0xa2   : > { %v3477_v22 = vpop.permute.xlu1 %587 }
  0xa3   : > { %v3479_v23 = vpop.permute.xlu0 %582  ;;  %v591_v19 = vmul.f32 %v3477_v22, %v3336_v18 }
  0xa4   : > { %v590_v24 = vmul.f32 %v3479_v23, %v3333_v17 }
  0xa6   : > { %v668_v25 = vpack.c.bf16 %v591_v19, %v590_v24  ;;  %v2960_v20 = vpop.permute.xlu1 %2959  ;;  %v3118_v24 = vld [vmem:[%s4088_s4 + $0x48] sm:$0xff]  }
  0xa7   : > { %v2962_v40 = vunpack.i.h.bf16 %v2960_v20  ;;  %v2961_v41 = vunpack.i.l.bf16 %v2960_v20  ;;  %v3119_v19 = vld [vmem:[%s4088_s4 + $0x8] sm:$0xff]   ;;  %2753 = vmatprep.subr.bf16.mxu1 %v3118_v24  ;;  %v3121_v20 = vld [vmem:[%s4088_s4 + $0x10] sm:$0xff]  }
  0xa8   : > { %2606 = vmatprep.mubr.msk.bf16.mxu0 %vm646_vm5, %v668_v25  ;;  %v3120_v25 = vld [vmem:[%s4088_s4 + $0x50] sm:$0xff]   ;;  %2754 = vmatpush3.bf16.msra.mxu1 %v3119_v19 }
  0xa9   : > { %2755 = vmatprep.subr.bf16.mxu1 %v3120_v25 }
  0xac   : > { %2756 = vmatpush3.bf16.msra.mxu1 %v3121_v20 }
 0x101   : > { %v2965_v26 = vpop.permute.xlu0 %2964  ;;  %v2970_v28 = vpop.permute.xlu1 %2969 }
 0x102   : > { %v2967_v29 = vunpack.i.h.bf16 %v2965_v26  ;;  %v2966_v30 = vunpack.i.l.bf16 %v2965_v26  ;;  %v2972_v17 = vunpack.i.h.bf16 %v2970_v28  ;;  %v2971_v35 = vunpack.i.l.bf16 %v2970_v28  ;;  %v3122_v26 = vld [vmem:[%s4088_s4 + $0x58] sm:$0xff]   ;;  %v3124_v28 = vld [vmem:[%s4088_s4 + $0x60] sm:$0xff]  }
 0x103   : > { %2757 = vmatprep.subr.bf16.mxu1 %v3122_v26 }
 0x104   : > { %v647_v18 = vsel %vm646_vm5, %v474_v32, %v2966_v30  ;;  %v648_v36 = vsel %vm646_vm5, %v475_v31, %v2967_v29  ;;  %v3125_v29 = vld [vmem:[%s4088_s4 + $0x20] sm:$0xff]   ;;  %v3126_v30 = vld [vmem:[%s4088_s4 + $0x68] sm:$0xff]   ;;  %v3128_v32 = vld [vmem:[%s4088_s4 + $0x70] sm:$0xff]  }
 0x105   : > { %v2975_v27 = vpop.permute.xlu0 %2974  ;;  %v650_v42 = vsel %vm649_vm6, %v647_v18, %v2971_v35  ;;  %v651_v33 = vsel %vm649_vm6, %v648_v36, %v2972_v17  ;;  %v3127_v31 = vld [vmem:[%s4088_s4 + $0x28] sm:$0xff]   ;;  %v3129_v17 = vld [vmem:[%s4088_s4 + $0x30] sm:$0xff]   ;;  %v2596_v35 = vld [vmem:[%s4087_s3] ss:$0 sm:$0xff] }
 0x106   : > { %v2977_v37 = vunpack.i.h.bf16 %v2975_v27  ;;  %v2976_v38 = vunpack.i.l.bf16 %v2975_v27  ;;  %v3123_v27 = vld [vmem:[%s4088_s4 + $0x18] sm:$0xff]  }
 0x107   : > { %2758 = vmatpush3.bf16.msra.mxu1 %v3123_v27 }
 0x108   : > { %v653_v34 = vsel %vm652_vm7, %v650_v42, %v2976_v38  ;;  %v654_v44 = vsel %vm652_vm7, %v651_v33, %v2977_v37  ;;  %2759 = vmatprep.subr.bf16.mxu1 %v3124_v28  ;;  %v3130_v42 = vld [vmem:[%s4088_s4 + $0x78] sm:$0xff]  }
 0x109   : > { %v656_v53 = vsel %vm655_vm8, %v653_v34, %v2961_v41  ;;  %v657_v54 = vsel %vm655_vm8, %v654_v44, %v2962_v40  ;;  %v3131_v33 = vld [vmem:[%s4088_s4 + $0x38] sm:$0xff]  }
 0x10a   : > { %v2980_v39 = vpop.permute.xlu0 %2979 }
 0x10b   : > { %v2982_v47 = vunpack.i.h.bf16 %v2980_v39  ;;  %v2981_v50 = vunpack.i.l.bf16 %v2980_v39  ;;  %2760 = vmatpush3.bf16.msra.mxu1 %v3125_v29 }
 0x10c   : > { %2761 = vmatprep.subr.bf16.mxu1 %v3126_v30 }
 0x10d   : > { %v659_v56 = vsel %vm658_vm9, %v656_v53, %v2981_v50  ;;  %v660_v59 = vsel %vm658_vm9, %v657_v54, %v2982_v47 }
 0x10e   : > { %v2985_v43 = vpop.permute.xlu1 %2984 }
 0x10f   : > { %v2987_v51 = vunpack.i.h.bf16 %v2985_v43  ;;  %v2986_v52 = vunpack.i.l.bf16 %v2985_v43  ;;  %2762 = vmatpush3.bf16.msra.mxu1 %v3127_v31 }
 0x110   : > { %2763 = vmatprep.subr.bf16.mxu1 %v3128_v32 }
 0x111   : > { %v662_v62 = vsel %vm661_vm10, %v659_v56, %v2986_v52  ;;  %v663_v1 = vsel %vm661_vm10, %v660_v59, %v2987_v51 }
 0x112   : > { %v2990_v55 = vpop.permute.xlu0 %2989 }
 0x113   : > { %v2992_v60 = vunpack.i.h.bf16 %v2990_v55  ;;  %v2991_v61 = vunpack.i.l.bf16 %v2990_v55  ;;  %2764 = vmatpush3.bf16.msra.mxu1 %v3129_v17  ;;  %v3132_v55 = vld [vmem:[%s4088_s4 + $0xc0] sm:$0xff]  }
 0x114   : > { %2765 = vmatprep.subr.bf16.mxu1 %v3130_v42 }
 0x115   : > { %v665_v3 = vsel %vm664_vm11, %v662_v62, %v2991_v61  ;;  %v666_v4 = vsel %vm664_vm11, %v663_v1, %v2992_v60 }
 0x116   : > { %v667_v7 = vpack.c.bf16 %v666_v4, %v665_v3 }
 0x117   : > { %2766 = vmatpush3.bf16.msra.mxu1 %v3131_v33 }
 0x118   : > { %766 = vmatmul.mubr.bf16.vlgmr.msra.gmra.mrb[0].mxu0 %v667_v7  ;;  %2773 = vmatprep.subr.bf16.mxu1 %v3132_v55 }
 0x119   : > { %2883 = vmatpush3.bf16.msra.mxu0 %v3112_v5  ;;  %2890 = vmatprep.mubr.msk.bf16.mxu0 %vm3223_vm12, %v3220_v9 }
 0x11a   : > { %2884 = vmatprep.subr.bf16.mxu0 %v3220_v9 }
 0x11d   : > { %2885 = vmatpush3.bf16.msra.mxu0 %v3113_v8 }
 0x11e   : > { %2886 = vmatprep.subr.bf16.mxu0 %v3220_v9 }
 0x121   : > { %2887 = vmatpush3.bf16.msra.mxu0 %v3114_v10 }
 0x122   : > { %2888 = vmatprep.subr.bf16.mxu0 %v3220_v9 }
 0x125   : > { %2889 = vmatpush3.bf16.msra.mxu0 %v3115_v13 }
 0x1eb   : > { %v767_v18 = vpop.f32.mrb[0].mxu0 }
 0x1ec   : > { %v768_v36 = vadd.f32 %v2596_v35, %v767_v18  ;;  %v769_v37 = vpop.f32.mrb[1].mxu0 }
 0x1ed   : > { %v770_v38 = vpop.f32.mrb[2].mxu0 }
 0x1ee   : > { %v3560_v39 = vmax.f32 %v768_v36, 0.0  ;;  %v771_v40 = vadd.f32 %v2596_v35, %v770_v38  ;;  %v772_v41 = vpop.f32.mrb[3].mxu0 }
 0x1f0   : > { %v3568_v43 = vmax.f32 %v771_v40, 0.0  ;;  %v870_v34 = vrot.slane %v3560_v39, 5  ;;  %v879_v44 = vrot.slane %v3560_v39, 7  ;;  %v861_v53 = vrot.slane %v3560_v39, 4 }
 0x1f1   : > { %v886_v54 = vrot.slane %v3560_v39, 1  ;;  %v852_v31 = vrot.slane %v3560_v39, 3 }
 0x1f2   : > { %v868_v47 = vrot.slane %v3568_v43, 5  ;;  %v877_v50 = vrot.slane %v3568_v43, 7  ;;  %v859_v51 = vrot.slane %v3568_v43, 4  ;;  %v887_v52 = vrot.slane %v3568_v43, 1 }
 0x1f3   : > { %v849_v30 = vrot.slane %v3568_v43, 3 }
 0x1f4   : > { %v880_v56 = vsel %vm518_vm2, %v879_v44, %v877_v50  ;;  %v883_v59 = vsel %vm518_vm2, %v877_v50, %v879_v44  ;;  %v871_v60 = vsel %vm498_vm0, %v870_v34, %v868_v47  ;;  %v874_v61 = vsel %vm498_vm0, %v868_v47, %v870_v34 }
 0x1f5   : > { %v884_v62 = vmul.f32 %v883_v59, %v3433_v58  ;;  %v885_v1 = vmul.f32 %v880_v56, %v3431_v57  ;;  %v899_v3 = vmul.f32 %v871_v60, %v3479_v23  ;;  %v900_v4 = vmul.f32 %v874_v61, %v3477_v22 }
 0x1f6   : > { %v862_v5 = vsel %vm478_vm1, %v861_v53, %v859_v51  ;;  %v865_v7 = vsel %vm478_vm1, %v859_v51, %v861_v53  ;;  %v888_v8 = vsel %vm536_vm3, %v886_v54, %v887_v52  ;;  %v892_v10 = vsel %vm536_vm3, %v887_v52, %v886_v54 }
 0x1f7   : > { %v2993_v13 = vpack.i.bf16 %v885_v1, %v884_v62  ;;  %v945_v14 = vpack.c.bf16 %v900_v4, %v899_v3  ;;  %v866_v15 = vmul.f32 %v865_v7, %v3409_v46  ;;  %v867_v24 = vmul.f32 %v862_v5, %v3417_v49  ;;  %v3134_v62 = vld [vmem:[%s4088_s4 + $0xc8] sm:$0xff]  }
 0x1f8   : > { %v897_v19 = vmul.f32 %v862_v5, %v3466_v12  ;;  %v898_v25 = vmul.f32 %v865_v7, %v3464_v11  ;;  %v893_v26 = vmul.f32 %v888_v8, %v3446_v0  ;;  %v894_v27 = vmul.f32 %v892_v10, %v3444_v63  ;;  %v3135_v5 = vld [vmem:[%s4088_s4 + $0x88] sm:$0xff]   ;;  %v3136_v7 = vld [vmem:[%s4088_s4 + $0xd0] sm:$0xff]   ;;  %v3138_v10 = vld [vmem:[%s4088_s4 + $0xd8] sm:$0xff]  }
 0x1f9   : > { %2994 = vrot.lane.b32.xlu1 %v2993_v13, %s3215_s29  ;;  %2891 = vmatmul.mubr.msk.bf16.vlgmr.msra.gmra.mrb[4].mxu0 %vm655_vm8, %v945_v14  ;;  %v2998_v20 = vpack.i.bf16 %v867_v24, %v866_v15  ;;  %v853_v32 = vsel %vm458_vm4, %v852_v31, %v849_v30  ;;  %v856_v17 = vsel %vm458_vm4, %v849_v30, %v852_v31  ;;  %v3137_v8 = vld [vmem:[%s4088_s4 + $0x90] sm:$0xff]   ;;  %v3139_v13 = vld [vmem:[%s4088_s4 + $0x98] sm:$0xff]   ;;  %v3140_v14 = vld [vmem:[%s4088_s4 + $0xe0] sm:$0xff]  }
 0x1fa   : > { %v3003_v28 = vpack.i.bf16 %v898_v25, %v897_v19  ;;  %v3008_v29 = vpack.i.bf16 %v894_v27, %v893_v26  ;;  %v875_v37 = vmul.f32 %v874_v61, %v3407_v45  ;;  %v876_v38 = vmul.f32 %v871_v60, %v3415_v48  ;;  %v3133_v60 = vld [vmem:[%s4088_s4 + $0x80] sm:$0xff]   ;;  %v3142_v24 = vld [vmem:[%s4088_s4 + $0xe8] sm:$0xff]   ;;  %v3144_v25 = vld [vmem:[%s4088_s4 + $0xf0] sm:$0xff]  }
 0x1fb   : > { %2999 = vrot.lane.b32.xlu0 %v2998_v20, %s3215_s29  ;;  %v857_v41 = vmul.f32 %v856_v17, %v3475_v21  ;;  %v858_v42 = vmul.f32 %v853_v32, %v3473_v16  ;;  %v895_v52 = vmul.f32 %v853_v32, %v3457_v2  ;;  %v896_v53 = vmul.f32 %v856_v17, %v3455_v6  ;;  %v3141_v15 = vld [vmem:[%s4088_s4 + $0xa0] sm:$0xff]   ;;  %v3143_v19 = vld [vmem:[%s4088_s4 + $0xa8] sm:$0xff]   ;;  %v3145_v26 = vld [vmem:[%s4088_s4 + $0xb0] sm:$0xff]  }
 0x1fc   : > { %v3146_v27 = vld [vmem:[%s4088_s4 + $0xf8] sm:$0xff]  }
 0x1fd   : > { %3004 = vrot.lane.b32.xlu1 %v3003_v28, %s3215_s29  ;;  %v3147_v30 = vld [vmem:[%s4088_s4 + $0xb8] sm:$0xff]  }
 0x1ff   : > { %3009 = vrot.lane.b32.xlu0 %v3008_v29, %s3215_s29 }
 0x26b   : > { %v2995_v35 = vpop.permute.xlu1 %2994 }
 0x26c   : > { %v2997_v18 = vunpack.i.h.bf16 %v2995_v35  ;;  %v2996_v36 = vunpack.i.l.bf16 %v2995_v35 }
 0x26d   : > { %v3000_v40 = vpop.permute.xlu0 %2999 }
 0x26e   : > { %v3002_v33 = vunpack.i.h.bf16 %v3000_v40  ;;  %v3001_v34 = vunpack.i.l.bf16 %v3000_v40  ;;  %v935_v44 = vsel %vm655_vm8, %v875_v37, %v2996_v36  ;;  %v936_v47 = vsel %vm655_vm8, %v876_v38, %v2997_v18  ;;  %v3148_v38 = vld [vmem:[%s4090_s6 + $0x80] sm:$0xff]  }
 0x26f   : > { %v3005_v50 = vpop.permute.xlu1 %3004  ;;  %v942_v51 = vpack.c.bf16 %v936_v47, %v935_v44  ;;  %v3151_v40 = vld [vmem:[%s4090_s6] sm:$0xff]   ;;  %v3156_v44 = vld [vmem:[%s4090_s6 + $0x58] sm:$0xff]  }
 0x270   : > { %v3007_v54 = vunpack.i.h.bf16 %v3005_v50  ;;  %v3006_v55 = vunpack.i.l.bf16 %v3005_v50  ;;  %v933_v56 = vsel %vm655_vm8, %v857_v41, %v3001_v34  ;;  %v934_v59 = vsel %vm655_vm8, %v858_v42, %v3002_v33  ;;  %v3152_v41 = vld [vmem:[%s4090_s6 + $0x48] sm:$0xff]   ;;  %v3154_v33 = vld [vmem:[%s4090_s6 + $0x50] sm:$0xff]   ;;  %v3157_v47 = vld [vmem:[%s4090_s6 + $0x18] sm:$0xff]  }
 0x271   : > { %1204 = vmatprep.mubr.bf16.mxu1 %v942_v51  ;;  %v941_v61 = vpack.c.bf16 %v934_v59, %v933_v56  ;;  %v3010_v20 = vpop.permute.xlu0 %3009  ;;  %v3153_v42 = vld [vmem:[%s4090_s6 + $0x8] sm:$0xff]   ;;  %v3155_v34 = vld [vmem:[%s4090_s6 + $0x10] sm:$0xff]   ;;  %v3158_v50 = vld [vmem:[%s4090_s6 + $0x60] sm:$0xff]  }
 0x272   : > { %v939_v1 = vsel %vm655_vm8, %v895_v52, %v3006_v55  ;;  %v940_v3 = vsel %vm655_vm8, %v896_v53, %v3007_v54  ;;  %v3012_v28 = vunpack.i.h.bf16 %v3010_v20  ;;  %v3011_v29 = vunpack.i.l.bf16 %v3010_v20  ;;  %v3159_v51 = vld [vmem:[%s4090_s6 + $0x20] sm:$0xff]   ;;  %v3161_v20 = vld [vmem:[%s4090_s6 + $0x28] sm:$0xff]  }
 0x273   : > { %1205 = vmatmul.mubr.bf16.vlgmr.msra.gmra.mrb[0].mxu1 %v941_v61  ;;  %v944_v4 = vpack.c.bf16 %v940_v3, %v939_v1 }
 0x274   : > { %2774 = vmatpush3.bf16.msra.mxu1 %v3133_v60  ;;  %v938_v31 = vsel %vm655_vm8, %v3568_v43, %v3012_v28  ;;  %v937_v32 = vsel %vm655_vm8, %v3560_v39, %v3011_v29  ;;  %v3149_v39 = vld [vmem:[%s4090_s6 + $0x88] sm:$0xff]   ;;  %v3150_v43 = vld [vmem:[%s4090_s6 + $0x40] sm:$0xff]  }
 0x275   : > { %2775 = vmatprep.subr.bf16.mxu1 %v3134_v62  ;;  %1245 = vmatprep.mubr.bf16.mxu1 %v944_v4  ;;  %v943_v17 = vpack.c.bf16 %v938_v31, %v937_v32  ;;  %v2607_v60 = vld [vmem:[%s4089_s5] ss:$0 sm:$0xff] }
 0x276   : > { %2800 = vmatprep.subr.bf16.mxu0 %v3150_v43 }
 0x277   : > { %2801 = vmatpush3.bf16.msra.mxu0 %v3151_v40 }
 0x278   : > { %2776 = vmatpush3.bf16.msra.mxu1 %v3135_v5  ;;  %2802 = vmatprep.subr.bf16.mxu0 %v3152_v41 }
 0x279   : > { %2777 = vmatprep.subr.bf16.mxu1 %v3136_v7 }
 0x27b   : > { %2803 = vmatpush3.bf16.msra.mxu0 %v3153_v42 }
 0x27c   : > { %2778 = vmatpush3.bf16.msra.mxu1 %v3137_v8  ;;  %2804 = vmatprep.subr.bf16.mxu0 %v3154_v33 }
 0x27d   : > { %2779 = vmatprep.subr.bf16.mxu1 %v3138_v10 }
 0x27f   : > { %2805 = vmatpush3.bf16.msra.mxu0 %v3155_v34 }
 0x280   : > { %2780 = vmatpush3.bf16.msra.mxu1 %v3139_v13  ;;  %2806 = vmatprep.subr.bf16.mxu0 %v3156_v44 }
 0x281   : > { %2781 = vmatprep.subr.bf16.mxu1 %v3140_v14 }
 0x283   : > { %2807 = vmatpush3.bf16.msra.mxu0 %v3157_v47 }
 0x284   : > { %2782 = vmatpush3.bf16.msra.mxu1 %v3141_v15  ;;  %2808 = vmatprep.subr.bf16.mxu0 %v3158_v50 }
 0x285   : > { %2783 = vmatprep.subr.bf16.mxu1 %v3142_v24 }
 0x287   : > { %2809 = vmatpush3.bf16.msra.mxu0 %v3159_v51 }
 0x288   : > { %2784 = vmatpush3.bf16.msra.mxu1 %v3143_v19 }
 0x289   : > { %2785 = vmatprep.subr.bf16.mxu1 %v3144_v25  ;;  %v3160_v25 = vld [vmem:[%s4090_s6 + $0x68] sm:$0xff]  }
 0x28a   : > { %2810 = vmatprep.subr.bf16.mxu0 %v3160_v25 }
 0x28b   : > { %2811 = vmatpush3.bf16.msra.mxu0 %v3161_v20 }
 0x28c   : > { %2786 = vmatpush3.bf16.msra.mxu1 %v3145_v26 }
 0x28d   : > { %2787 = vmatprep.subr.bf16.mxu1 %v3146_v27 }
 0x290   : > { %2788 = vmatpush3.bf16.msra.mxu1 %v3147_v30 }
 0x291   : > { %2894 = vmatprep.subr.bf16.mxu1 %v3220_v9 }
 0x293   : > { %1246 = vmatmul.mubr.bf16.vlgmr.msra.gmra.mrb[4].mxu1 %v943_v17 }
 0x294   : > { %2898 = vmatprep.mubr.msk.bf16.mxu1 %vm3223_vm12, %v3220_v9  ;;  %2895 = vmatpush3.bf16.msra.mxu1 %v3148_v38  ;;  %v3163_v38 = vld [vmem:[%s4090_s6 + $0x30] sm:$0xff]  }
 0x295   : > { %2896 = vmatprep.subr.bf16.mxu1 %v3220_v9 }
 0x298   : > { %2897 = vmatpush3.bf16.msra.mxu1 %v3149_v39 }
 0x2cc   : > { %v1288_v35 = vpop.f32.mrb[4].mxu0 }
 0x2cd   : > { %v2892_v18 = vpop.f32.mrb[5].mxu0 }
 0x2ce   : > { %v1291_v36 = vpop.f32.mrb[6].mxu0 }
 0x2cf   : > { %v2893_v37 = vpop.f32.mrb[7].mxu0 }
 0x2d0   : > { %v3162_v37 = vld [vmem:[%s4090_s6 + $0x70] sm:$0xff]  }
 0x2d1   : > { %2812 = vmatprep.subr.bf16.mxu0 %v3162_v37 }
 0x2d2   : > { %2813 = vmatpush3.bf16.msra.mxu0 %v3163_v38 }
 0x346   : > { %v2767_v52 = vpop.f32.mrb[0].mxu1 }
 0x347   : > { %v2768_v53 = vpop.f32.mrb[1].mxu1 }
 0x348   : > { %v2769_v54 = vadd.f32 %v2768_v53, %v2767_v52  ;;  %v2770_v55 = vpop.f32.mrb[2].mxu1 }
 0x349   : > { %v2771_v56 = vpop.f32.mrb[3].mxu1 }
 0x34a   : > { %v2772_v59 = vadd.f32 %v2771_v56, %v2770_v55  ;;  %v1207_v1 = vadd.f32 %v2769_v54, %v2607_v60 }
 0x34c   : > { %v1210_v7 = vadd.f32 %v2772_v59, %v2607_v60 }
 0x366   : > { %v2789_v61 = vpop.f32.mrb[4].mxu1 }
 0x367   : > { %v2790_v62 = vpop.f32.mrb[5].mxu1 }
 0x368   : > { %v2791_v3 = vadd.f32 %v2790_v62, %v2789_v61  ;;  %v2792_v4 = vpop.f32.mrb[6].mxu1  ;;  %v3164_v62 = vld [vmem:[%s4090_s6 + $0x78] sm:$0xff]  }
 0x369   : > { %v2793_v5 = vpop.f32.mrb[7].mxu1  ;;  %2814 = vmatprep.subr.bf16.mxu0 %v3164_v62 }
 0x36a   : > { %v1248_v8 = vadd.f32 %v2791_v3, %v1207_v1  ;;  %v2794_v10 = vadd.f32 %v2793_v5, %v2792_v4  ;;  %v3165_v1 = vld [vmem:[%s4090_s6 + $0x38] sm:$0xff]  }
 0x36b   : > { %2815 = vmatpush3.bf16.msra.mxu0 %v3165_v1 }
 0x36c   : > { %v1289_v13 = vadd.f32 %v1288_v35, %v1248_v8  ;;  %v1251_v14 = vadd.f32 %v2794_v10, %v1210_v7  ;;  %2902 = vmatprep.subr.bf16.mxu0 %v3220_v9 }
 0x36e   : > { %v3712_v15 = vmax.f32 %v1289_v13, 0.0  ;;  %v1292_v24 = vadd.f32 %v1291_v36, %v1251_v14 }
 0x370   : > { %v3714_v19 = vmax.f32 %v1292_v24, 0.0  ;;  %v1371_v26 = vrot.slane %v3712_v15, 1  ;;  %v1355_v29 = vrot.slane %v3712_v15, 5  ;;  %v1346_v31 = vrot.slane %v3712_v15, 4 }
 0x371   : > { %v1337_v34 = vrot.slane %v3712_v15, 3  ;;  %v1364_v56 = vrot.slane %v3712_v15, 7 }
 0x372   : > { %v1372_v27 = vrot.slane %v3714_v19, 1  ;;  %v1353_v28 = vrot.slane %v3714_v19, 5  ;;  %v1344_v30 = vrot.slane %v3714_v19, 4  ;;  %v1334_v32 = vrot.slane %v3714_v19, 3 }
 0x373   : > { %v1362_v44 = vrot.slane %v3714_v19, 7 }
 0x374   : > { %v1373_v17 = vsel %vm536_vm3, %v1371_v26, %v1372_v27  ;;  %v1377_v35 = vsel %vm536_vm3, %v1372_v27, %v1371_v26  ;;  %v1356_v18 = vsel %vm498_vm0, %v1355_v29, %v1353_v28  ;;  %v1359_v36 = vsel %vm498_vm0, %v1353_v28, %v1355_v29 }
 0x375   : > { %v1378_v39 = vmul.f32 %v1373_v17, %v3446_v0  ;;  %v1379_v43 = vmul.f32 %v1377_v35, %v3444_v63  ;;  %v1384_v40 = vmul.f32 %v1356_v18, %v3479_v23  ;;  %v1385_v41 = vmul.f32 %v1359_v36, %v3477_v22 }
 0x376   : > { %v1347_v42 = vsel %vm478_vm1, %v1346_v31, %v1344_v30  ;;  %v1350_v33 = vsel %vm478_vm1, %v1344_v30, %v1346_v31  ;;  %v1360_v53 = vmul.f32 %v1359_v36, %v3407_v45  ;;  %v1338_v54 = vsel %vm458_vm4, %v1337_v34, %v1334_v32 }
 0x377   : > { %v3013_v47 = vpack.i.bf16 %v1379_v43, %v1378_v39  ;;  %v1448_v50 = vpack.c.bf16 %v1385_v41, %v1384_v40  ;;  %v1351_v51 = vmul.f32 %v1350_v33, %v3409_v46  ;;  %v1352_v52 = vmul.f32 %v1347_v42, %v3417_v49 }
 0x378   : > { %v1341_v55 = vsel %vm458_vm4, %v1334_v32, %v1337_v34  ;;  %v1361_v60 = vmul.f32 %v1356_v18, %v3415_v48  ;;  %v1380_v61 = vmul.f32 %v1338_v54, %v3457_v2  ;;  %v1365_v4 = vsel %vm518_vm2, %v1364_v56, %v1362_v44 }
 0x379   : > { %3014 = vrot.lane.b32.xlu1 %v3013_v47, %s3216_s14  ;;  %2899 = vmatmul.mubr.msk.bf16.vlgmr.msra.gmra.mrb[8].mxu1 %vm649_vm6, %v1448_v50  ;;  %v3018_v59 = vpack.i.bf16 %v1352_v52, %v1351_v51  ;;  %v1381_v3 = vmul.f32 %v1341_v55, %v3455_v6  ;;  %v1368_v5 = vsel %vm518_vm2, %v1362_v44, %v1364_v56 }
 0x37a   : > { %v1382_v8 = vmul.f32 %v1347_v42, %v3466_v12  ;;  %v1383_v10 = vmul.f32 %v1350_v33, %v3464_v11  ;;  %v3028_v13 = vpack.i.bf16 %v1361_v60, %v1360_v53  ;;  %v1369_v14 = vmul.f32 %v1368_v5, %v3433_v58  ;;  %v3166_v5 = vld [vmem:[%s4092_s8 + $0x80] sm:$0xff]  }
 0x37b   : > { %3019 = vrot.lane.b32.xlu0 %v3018_v59, %s3216_s14  ;;  %v3023_v7 = vpack.i.bf16 %v1381_v3, %v1380_v61  ;;  %v1370_v24 = vmul.f32 %v1365_v4, %v3431_v57  ;;  %v1342_v36 = vmul.f32 %v1341_v55, %v3475_v21  ;;  %v1343_v37 = vmul.f32 %v1338_v54, %v3473_v16 }
 0x37c   : > { %v3033_v25 = vpack.i.bf16 %v1383_v10, %v1382_v8  ;;  %v3168_v8 = vld [vmem:[%s4092_s8 + $0x40] sm:$0xff]  }
 0x37d   : > { %3024 = vrot.lane.b32.xlu1 %v3023_v7, %s3215_s29  ;;  %v3038_v20 = vpack.i.bf16 %v1370_v24, %v1369_v14  ;;  %v3167_v7 = vld [vmem:[%s4092_s8 + $0x88] sm:$0xff]   ;;  %v3169_v10 = vld [vmem:[%s4092_s8] sm:$0xff]   ;;  %2825 = vmatprep.subr.bf16.mxu1 %v3168_v8  ;;  %v3172_v24 = vld [vmem:[%s4092_s8 + $0x50] sm:$0xff]  }
 0x37e   : > { %2826 = vmatpush3.bf16.msra.mxu1 %v3169_v10  ;;  %v3171_v14 = vld [vmem:[%s4092_s8 + $0x8] sm:$0xff]  }
 0x37f   : > { %3029 = vrot.lane.b32.xlu0 %v3028_v13, %s3215_s29  ;;  %v3170_v13 = vld [vmem:[%s4092_s8 + $0x48] sm:$0xff]  }
 0x380   : > { %2827 = vmatprep.subr.bf16.mxu1 %v3170_v13 }
 0x381   : > { %3034 = vrot.lane.b32.xlu1 %v3033_v25, %s3221_s22  ;;  %v3173_v25 = vld [vmem:[%s4092_s8 + $0x10] sm:$0xff]  }
 0x382   : > { %2828 = vmatpush3.bf16.msra.mxu1 %v3171_v14 }
 0x383   : > { %3039 = vrot.lane.b32.xlu0 %v3038_v20, %s3221_s22  ;;  %2829 = vmatprep.subr.bf16.mxu1 %v3172_v24  ;;  %v3174_v20 = vld [vmem:[%s4092_s8 + $0x58] sm:$0xff]  }
 0x386   : > { %2830 = vmatpush3.bf16.msra.mxu1 %v3173_v25 }
 0x387   : > { %2831 = vmatprep.subr.bf16.mxu1 %v3174_v20 }
 0x3eb   : > { %v3015_v26 = vpop.permute.xlu1 %3014 }
 0x3ec   : > { %v3017_v28 = vunpack.i.h.bf16 %v3015_v26  ;;  %v3016_v29 = vunpack.i.l.bf16 %v3015_v26  ;;  %v3175_v26 = vld [vmem:[%s4092_s8 + $0x18] sm:$0xff]  }
 0x3ed   : > { %v3020_v27 = vpop.permute.xlu0 %3019  ;;  %2832 = vmatpush3.bf16.msra.mxu1 %v3175_v26 }
 0x3ee   : > { %v3022_v31 = vunpack.i.h.bf16 %v3020_v27  ;;  %v3021_v32 = vunpack.i.l.bf16 %v3020_v27  ;;  %v1441_v43 = vsel %vm649_vm6, %v3714_v19, %v3017_v28  ;;  %v1440_v40 = vsel %vm649_vm6, %v3712_v15, %v3016_v29  ;;  %v3176_v27 = vld [vmem:[%s4092_s8 + $0x60] sm:$0xff]  }
 0x3ef   : > { %v3025_v30 = vpop.permute.xlu1 %3024  ;;  %v3177_v28 = vld [vmem:[%s4092_s8 + $0x20] sm:$0xff]   ;;  %2833 = vmatprep.subr.bf16.mxu1 %v3176_v27 }
 0x3f0   : > { %v3027_v35 = vunpack.i.h.bf16 %v3025_v30  ;;  %v3026_v18 = vunpack.i.l.bf16 %v3025_v30  ;;  %v1434_v42 = vsel %vm649_vm6, %v1342_v36, %v3021_v32  ;;  %v1435_v33 = vsel %vm649_vm6, %v1343_v37, %v3022_v31  ;;  %v2645_v30 = vld [vmem:[%s4091_s7] ss:$0 sm:$0xff] }
 0x3f1   : > { %v3030_v17 = vpop.permute.xlu0 %3029  ;;  %2834 = vmatpush3.bf16.msra.mxu1 %v3177_v28 }
 0x3f2   : > { %v3032_v38 = vunpack.i.h.bf16 %v3030_v17  ;;  %v3031_v39 = vunpack.i.l.bf16 %v3030_v17  ;;  %v1443_v50 = vsel %vm655_vm8, %v1441_v43, %v3027_v35  ;;  %v1442_v51 = vsel %vm655_vm8, %v1440_v40, %v3026_v18 }
 0x3f3   : > { %v3035_v41 = vpop.permute.xlu1 %3034 }
 0x3f4   : > { %v3037_v44 = vunpack.i.h.bf16 %v3035_v41  ;;  %v3036_v47 = vunpack.i.l.bf16 %v3035_v41  ;;  %v1436_v54 = vsel %vm655_vm8, %v1434_v42, %v3031_v39  ;;  %v1437_v19 = vsel %vm655_vm8, %v1435_v33, %v3032_v38  ;;  %v3178_v41 = vld [vmem:[%s4092_s8 + $0x68] sm:$0xff]  }
 0x3f5   : > { %v3040_v34 = vpop.permute.xlu0 %3039  ;;  %v3179_v42 = vld [vmem:[%s4092_s8 + $0x28] sm:$0xff]   ;;  %2835 = vmatprep.subr.bf16.mxu1 %v3178_v41 }
 0x3f6   : > { %v3042_v52 = vunpack.i.h.bf16 %v3040_v34  ;;  %v3041_v53 = vunpack.i.l.bf16 %v3040_v34  ;;  %v1444_v15 = vsel %vm661_vm10, %v1442_v51, %v3036_v47  ;;  %v1445_v55 = vsel %vm661_vm10, %v1443_v50, %v3037_v44  ;;  %2836 = vmatpush3.bf16.msra.mxu1 %v3179_v42 }
 0x3f7   : > { %v1447_v60 = vpack.c.bf16 %v1445_v55, %v1444_v15  ;;  %v3180_v55 = vld [vmem:[%s4092_s8 + $0x70] sm:$0xff]  }
 0x3f8   : > { %v1438_v56 = vsel %vm661_vm10, %v1436_v54, %v3041_v53  ;;  %v1439_v59 = vsel %vm661_vm10, %v1437_v19, %v3042_v52  ;;  %2837 = vmatprep.subr.bf16.mxu1 %v3180_v55 }
 0x3f9   : > { %v1446_v61 = vpack.c.bf16 %v1439_v59, %v1438_v56  ;;  %1599 = vmatprep.mubr.bf16.mxu0 %v1447_v60  ;;  %v3181_v56 = vld [vmem:[%s4092_s8 + $0x30] sm:$0xff]  }
 0x3fa   : > { %2838 = vmatpush3.bf16.msra.mxu1 %v3181_v56 }
 0x3fb   : > { %1600 = vmatmul.mubr.bf16.vlgmr.msra.gmra.mrb[8].mxu0 %v1446_v61 }
 0x3fc   : > { %2906 = vmatprep.mubr.msk.bf16.mxu0 %vm3223_vm12, %v3220_v9  ;;  %2903 = vmatpush3.bf16.msra.mxu0 %v3166_v5 }
 0x3fd   : > { %2904 = vmatprep.subr.bf16.mxu0 %v3220_v9 }
 0x400   : > { %2905 = vmatpush3.bf16.msra.mxu0 %v3167_v7 }
 0x401   : > { %2910 = vmatprep.subr.bf16.mxu0 %v3220_v9 }
 0x44c   : > { %v1642_v62 = vpop.f32.mrb[8].mxu1 }
 0x44d   : > { %v2900_v1 = vpop.f32.mrb[9].mxu1 }
 0x44e   : > { %v1645_v3 = vpop.f32.mrb[10].mxu1 }
 0x44f   : > { %v2901_v4 = vpop.f32.mrb[11].mxu1 }
 0x4ce   : > { %v2816_v29 = vpop.f32.mrb[8].mxu0 }
 0x4cf   : > { %v2817_v31 = vpop.f32.mrb[9].mxu0 }
 0x4d0   : > { %v2818_v32 = vadd.f32 %v2817_v31, %v2816_v29  ;;  %v2819_v17 = vpop.f32.mrb[10].mxu0  ;;  %v3182_v29 = vld [vmem:[%s4092_s8 + $0x78] sm:$0xff]  }
 0x4d1   : > { %v2820_v35 = vpop.f32.mrb[11].mxu0  ;;  %2839 = vmatprep.subr.bf16.mxu1 %v3182_v29 }
 0x4d2   : > { %v1602_v18 = vadd.f32 %v2818_v32, %v2645_v30  ;;  %v2821_v36 = vadd.f32 %v2820_v35, %v2819_v17 }
 0x4d4   : > { %v3835_v37 = vadd.f32 %v1642_v62, %v1602_v18  ;;  %v1605_v38 = vadd.f32 %v2821_v36, %v2645_v30  ;;  %v3183_v30 = vld [vmem:[%s4092_s8 + $0x38] sm:$0xff]  }
 0x4d5   : > { %2840 = vmatpush3.bf16.msra.mxu1 %v3183_v30 }
 0x4d6   : > { %v3838_v39 = vmax.f32 %v3835_v37, 0.0  ;;  %v3840_v43 = vadd.f32 %v1645_v3, %v1605_v38  ;;  %2916 = vmatprep.subr.bf16.mxu1 %v3220_v9 }
 0x4d8   : > { %v3843_v40 = vmax.f32 %v3840_v43, 0.0  ;;  %v1725_v33 = vrot.slane %v3838_v39, 1  ;;  %v1709_v47 = vrot.slane %v3838_v39, 5  ;;  %v1700_v51 = vrot.slane %v3838_v39, 4 }
 0x4d9   : > { %v1691_v4 = vrot.slane %v3838_v39, 3  ;;  %v1718_v20 = vrot.slane %v3838_v39, 7 }
 0x4da   : > { %v1726_v34 = vrot.slane %v3843_v40, 1  ;;  %v1707_v44 = vrot.slane %v3843_v40, 5  ;;  %v1698_v50 = vrot.slane %v3843_v40, 4  ;;  %v1688_v52 = vrot.slane %v3843_v40, 3 }
 0x4db   : > { %v1716_v5 = vrot.slane %v3843_v40, 7 }
 0x4dc   : > { %v1727_v53 = vsel %vm536_vm3, %v1725_v33, %v1726_v34  ;;  %v1731_v54 = vsel %vm536_vm3, %v1726_v34, %v1725_v33  ;;  %v1710_v19 = vsel %vm498_vm0, %v1709_v47, %v1707_v44  ;;  %v1713_v15 = vsel %vm498_vm0, %v1707_v44, %v1709_v47 }
 0x4dd   : > { %v1732_v59 = vmul.f32 %v1727_v53, %v3446_v0  ;;  %v1733_v60 = vmul.f32 %v1731_v54, %v3444_v63  ;;  %v1738_v61 = vmul.f32 %v1710_v19, %v3479_v23  ;;  %v1739_v62 = vmul.f32 %v1713_v15, %v3477_v22 }
 0x4de   : > { %v1701_v1 = vsel %vm478_vm1, %v1700_v51, %v1698_v50  ;;  %v1704_v3 = vsel %vm478_vm1, %v1698_v50, %v1700_v51  ;;  %v1714_v14 = vmul.f32 %v1713_v15, %v3407_v45  ;;  %v1692_v24 = vsel %vm458_vm4, %v1691_v4, %v1688_v52 }
 0x4df   : > { %v3043_v7 = vpack.i.bf16 %v1733_v60, %v1732_v59  ;;  %v1802_v8 = vpack.c.bf16 %v1739_v62, %v1738_v61  ;;  %v1705_v10 = vmul.f32 %v1704_v3, %v3409_v46  ;;  %v1706_v13 = vmul.f32 %v1701_v1, %v3417_v49 }
 0x4e0   : > { %v1695_v25 = vsel %vm458_vm4, %v1688_v52, %v1691_v4  ;;  %v1715_v27 = vmul.f32 %v1710_v19, %v3415_v48  ;;  %v1734_v28 = vmul.f32 %v1692_v24, %v3457_v2  ;;  %v1719_v32 = vsel %vm518_vm2, %v1718_v20, %v1716_v5 }
 0x4e1   : > { %3044 = vrot.lane.b32.xlu1 %v3043_v7, %s3216_s14  ;;  %2907 = vmatmul.mubr.msk.bf16.vlgmr.msra.gmra.mrb[12].mxu0 %vm649_vm6, %v1802_v8  ;;  %v3048_v26 = vpack.i.bf16 %v1706_v13, %v1705_v10  ;;  %v1735_v31 = vmul.f32 %v1695_v25, %v3455_v6  ;;  %v1722_v17 = vsel %vm518_vm2, %v1716_v5, %v1718_v20 }
 0x4e2   : > { %2912 = vmatprep.mubr.msk.bf16.mxu0 %vm3223_vm12, %v3220_v9  ;;  %v1736_v18 = vmul.f32 %v1701_v1, %v3466_v12  ;;  %v1737_v36 = vmul.f32 %v1704_v3, %v3464_v11  ;;  %v3058_v38 = vpack.i.bf16 %v1715_v27, %v1714_v14  ;;  %v1723_v41 = vmul.f32 %v1722_v17, %v3433_v58 }
 0x4e3   : > { %3049 = vrot.lane.b32.xlu0 %v3048_v26, %s3216_s14  ;;  %v3053_v35 = vpack.i.bf16 %v1735_v31, %v1734_v28  ;;  %v1724_v42 = vmul.f32 %v1719_v32, %v3431_v57  ;;  %v1696_v56 = vmul.f32 %v1695_v25, %v3475_v21  ;;  %v1697_v59 = vmul.f32 %v1692_v24, %v3473_v16 }
 0x4e4   : > { %v3063_v33 = vpack.i.bf16 %v1737_v36, %v1736_v18  ;;  %v3184_v18 = vld [vmem:[%s4093_s9] sm:$0xff]  }
 0x4e5   : > { %3054 = vrot.lane.b32.xlu1 %v3053_v35, %s3215_s29  ;;  %v3068_v34 = vpack.i.bf16 %v1724_v42, %v1723_v41  ;;  %2911 = vmatpush3.bf16.msra.mxu0 %v3184_v18 }
 0x4e7   : > { %3059 = vrot.lane.b32.xlu0 %v3058_v38, %s3215_s29 }
 0x4e9   : > { %3064 = vrot.lane.b32.xlu1 %v3063_v33, %s3221_s22 }
 0x4eb   : > { %3069 = vrot.lane.b32.xlu0 %v3068_v34, %s3221_s22 }
 0x553   : > { %v3045_v44 = vpop.permute.xlu1 %3044 }
 0x554   : > { %v3047_v50 = vunpack.i.h.bf16 %v3045_v44  ;;  %v3046_v51 = vunpack.i.l.bf16 %v3045_v44 }
 0x555   : > { %v3050_v47 = vpop.permute.xlu0 %3049 }
 0x556   : > { %v3052_v53 = vunpack.i.h.bf16 %v3050_v47  ;;  %v3051_v54 = vunpack.i.l.bf16 %v3050_v47  ;;  %v1795_v62 = vsel %vm649_vm6, %v3843_v40, %v3047_v50  ;;  %v1794_v1 = vsel %vm649_vm6, %v3838_v39, %v3046_v51 }
 0x557   : > { %v3055_v52 = vpop.permute.xlu1 %3054 }
 0x558   : > { %v3057_v15 = vunpack.i.h.bf16 %v3055_v52  ;;  %v3056_v55 = vunpack.i.l.bf16 %v3055_v52  ;;  %v1788_v4 = vsel %vm649_vm6, %v1696_v56, %v3051_v54  ;;  %v1789_v5 = vsel %vm649_vm6, %v1697_v59, %v3052_v53  ;;  %v3185_v53 = vld [vmem:[%s4092_s8 + $0x110] sm:$0xff]   ;;  %v3186_v54 = vld [vmem:[%s4092_s8 + $0x118] sm:$0xff]   ;;  %v3191_v59 = vld [vmem:[%s4092_s8 + $0xe0] sm:$0xff]  }
 0x559   : > { %v3060_v19 = vpop.permute.xlu0 %3059  ;;  %v3190_v56 = vld [vmem:[%s4092_s8 + $0x98] sm:$0xff]  }
 0x55a   : > { %v3062_v60 = vunpack.i.h.bf16 %v3060_v19  ;;  %v3061_v61 = vunpack.i.l.bf16 %v3060_v19  ;;  %v1797_v13 = vsel %vm655_vm8, %v1795_v62, %v3057_v15  ;;  %v1796_v14 = vsel %vm655_vm8, %v1794_v1, %v3056_v55  ;;  %v3187_v19 = vld [vmem:[%s4092_s8 + $0xd0] sm:$0xff]   ;;  %v3189_v55 = vld [vmem:[%s4092_s8 + $0xd8] sm:$0xff]   ;;  %v3194_v62 = vld [vmem:[%s4092_s8 + $0xa8] sm:$0xff]  }
 0x55b   : > { %v3065_v3 = vpop.permute.xlu1 %3064  ;;  %v3188_v15 = vld [vmem:[%s4092_s8 + $0x90] sm:$0xff]   ;;  %2852 = vmatprep.subr.bf16.mxu0 %v3187_v19 }
 0x55c   : > { %v3067_v8 = vunpack.i.h.bf16 %v3065_v3  ;;  %v3066_v10 = vunpack.i.l.bf16 %v3065_v3  ;;  %v1790_v20 = vsel %vm655_vm8, %v1788_v4, %v3061_v61  ;;  %v1791_v40 = vsel %vm655_vm8, %v1789_v5, %v3062_v60  ;;  %v3192_v60 = vld [vmem:[%s4092_s8 + $0xa0] sm:$0xff]   ;;  %v3193_v61 = vld [vmem:[%s4092_s8 + $0xe8] sm:$0xff]   ;;  %v3195_v1 = vld [vmem:[%s4092_s8 + $0xf0] sm:$0xff]  }
 0x55d   : > { %v3070_v7 = vpop.permute.xlu0 %3069  ;;  %v3196_v3 = vld [vmem:[%s4092_s8 + $0xb0] sm:$0xff]  }
 0x55e   : > { %v3072_v24 = vunpack.i.h.bf16 %v3070_v7  ;;  %v3071_v25 = vunpack.i.l.bf16 %v3070_v7  ;;  %v1798_v39 = vsel %vm661_vm10, %v1796_v14, %v3066_v10  ;;  %v1799_v26 = vsel %vm661_vm10, %v1797_v13, %v3067_v8 }
 0x55f   : > { %v1801_v29 = vpack.c.bf16 %v1799_v26, %v1798_v39 }
 0x560   : > { %v1792_v27 = vsel %vm661_vm10, %v1790_v20, %v3071_v25  ;;  %v1793_v28 = vsel %vm661_vm10, %v1791_v40, %v3072_v24  ;;  %v3197_v25 = vld [vmem:[%s4092_s8 + $0xf8] sm:$0xff]  }
 0x561   : > { %v1800_v30 = vpack.c.bf16 %v1793_v28, %v1792_v27  ;;  %1946 = vmatprep.mubr.bf16.mxu1 %v1801_v29 }
 0x563   : > { %1947 = vmatmul.mubr.bf16.vlgmr.msra.gmra.mrb[12].mxu1 %v1800_v30 }
 0x564   : > { %2920 = vmatprep.mubr.msk.bf16.mxu1 %vm3223_vm12, %v3220_v9  ;;  %2917 = vmatpush3.bf16.msra.mxu1 %v3185_v53 }
 0x565   : > { %2918 = vmatprep.subr.bf16.mxu1 %v3220_v9 }
 0x568   : > { %2919 = vmatpush3.bf16.msra.mxu1 %v3186_v54 }
 0x569   : > { %2924 = vmatprep.subr.bf16.mxu1 %v3220_v9 }
 0x5b4   : > { %v1989_v31 = vpop.f32.mrb[12].mxu0 }
 0x5b5   : > { %v2908_v32 = vpop.f32.mrb[13].mxu0 }
 0x5b6   : > { %v1992_v17 = vpop.f32.mrb[14].mxu0 }
 0x5b7   : > { %v2909_v35 = vpop.f32.mrb[15].mxu0 }
 0x5b8   : > { %v3200_v35 = vld [vmem:[%s4092_s8 + $0xc0] sm:$0xff]  }
 0x636   : > { %v2841_v36 = vpop.f32.mrb[12].mxu1 }
 0x637   : > { %v2842_v38 = vpop.f32.mrb[13].mxu1 }
 0x638   : > { %v2843_v41 = vadd.f32 %v2842_v38, %v2841_v36  ;;  %v2844_v42 = vpop.f32.mrb[14].mxu1 }
 0x639   : > { %v2845_v33 = vpop.f32.mrb[15].mxu1 }
 0x63a   : > { %v1990_v34 = vadd.f32 %v2843_v41, %v1989_v31  ;;  %v2846_v44 = vadd.f32 %v2845_v33, %v2844_v42 }
 0x63c   : > { %v1993_v47 = vadd.f32 %v2846_v44, %v1992_v17  ;;  %v1996_v50 = vmax.f32 %v1990_v34, 0.0  ;;  %v3199_v17 = vld [vmem:[%s4092_s8 + $0x100] sm:$0xff]  }
 0x63e   : > { %v1997_v51 = vmax.f32 %v1993_v47, 0.0 }
 0x640   : > { %v2000_v52 = vpack.c.bf16 %v1997_v51, %v1996_v50 }
 0x642   : > { %2913 = vmatmul.mubr.msk.bf16.vlgmr.msra.gmra.mrb[16].mxu0 %vm646_vm5, %v2000_v52 }
 0x643   : > { %2853 = vmatpush3.bf16.msra.mxu0 %v3188_v15 }
 0x644   : > { %2854 = vmatprep.subr.bf16.mxu0 %v3189_v55 }
 0x647   : > { %2855 = vmatpush3.bf16.msra.mxu0 %v3190_v56 }
 0x648   : > { %2856 = vmatprep.subr.bf16.mxu0 %v3191_v59 }
 0x64b   : > { %2857 = vmatpush3.bf16.msra.mxu0 %v3192_v60 }
 0x64c   : > { %2858 = vmatprep.subr.bf16.mxu0 %v3193_v61 }
 0x64f   : > { %2859 = vmatpush3.bf16.msra.mxu0 %v3194_v62 }
 0x650   : > { %2860 = vmatprep.subr.bf16.mxu0 %v3195_v1 }
 0x653   : > { %2861 = vmatpush3.bf16.msra.mxu0 %v3196_v3 }
 0x654   : > { %2862 = vmatprep.subr.bf16.mxu0 %v3197_v25 }
 0x715   : > { %v2044_v4 = vpop.f32.mrb[16].mxu0 }
 0x716   : > { %v3968_v5 = vadd.f32 %v2044_v4, %v3835_v37  ;;  %v2914_v7 = vpop.f32.mrb[17].mxu0  ;;  %v3198_v37 = vld [vmem:[%s4092_s8 + $0xb8] sm:$0xff]  }
 0x717   : > { %v2047_v8 = vpop.f32.mrb[18].mxu0  ;;  %2863 = vmatpush3.bf16.msra.mxu0 %v3198_v37 }
 0x718   : > { %v3971_v10 = vmax.f32 %v3968_v5, 0.0  ;;  %v3974_v13 = vadd.f32 %v2047_v8, %v3840_v43  ;;  %v2915_v14 = vpop.f32.mrb[19].mxu0  ;;  %2864 = vmatprep.subr.bf16.mxu0 %v3199_v17 }
 0x71a   : > { %v3977_v24 = vmax.f32 %v3974_v13, 0.0  ;;  %v2130_v20 = vrot.slane %v3971_v10, 1  ;;  %v2114_v43 = vrot.slane %v3971_v10, 5  ;;  %v2105_v27 = vrot.slane %v3971_v10, 4 }
 0x71b   : > { %v2096_v34 = vrot.slane %v3971_v10, 3  ;;  %2865 = vmatpush3.bf16.msra.mxu0 %v3200_v35  ;;  %v2123_v52 = vrot.slane %v3971_v10, 7 }
 0x71c   : > { %v2131_v40 = vrot.slane %v3977_v24, 1  ;;  %v2112_v39 = vrot.slane %v3977_v24, 5  ;;  %v2103_v26 = vrot.slane %v3977_v24, 4  ;;  %v2093_v28 = vrot.slane %v3977_v24, 3 }
 0x71d   : > { %v2121_v44 = vrot.slane %v3977_v24, 7 }
 0x71e   : > { %v2132_v29 = vsel %vm536_vm3, %v2130_v20, %v2131_v40  ;;  %v2136_v30 = vsel %vm536_vm3, %v2131_v40, %v2130_v20  ;;  %v2115_v31 = vsel %vm498_vm0, %v2114_v43, %v2112_v39  ;;  %v2118_v32 = vsel %vm498_vm0, %v2112_v39, %v2114_v43 }
 0x71f   : > { %v2137_v18 = vmul.f32 %v2132_v29, %v3446_v0  ;;  %v2138_v36 = vmul.f32 %v2136_v30, %v3444_v63  ;;  %v2143_v38 = vmul.f32 %v2115_v31, %v3479_v23  ;;  %v2144_v41 = vmul.f32 %v2118_v32, %v3477_v22 }
 0x720   : > { %v2106_v42 = vsel %vm478_vm1, %v2105_v27, %v2103_v26  ;;  %v2109_v33 = vsel %vm478_vm1, %v2103_v26, %v2105_v27  ;;  %v2119_v63 = vmul.f32 %v2118_v32, %v3407_v45  ;;  %v2097_v22 = vsel %vm458_vm4, %v2096_v34, %v2093_v28  ;;  %v3202_v45 = vld [vmem:[%s4092_s8 + $0xc8] sm:$0xff]  }
 0x721   : > { %v3073_v47 = vpack.i.bf16 %v2138_v36, %v2137_v18  ;;  %v2207_v50 = vpack.c.bf16 %v2144_v41, %v2143_v38  ;;  %v2110_v51 = vmul.f32 %v2109_v33, %v3409_v46  ;;  %v2111_v0 = vmul.f32 %v2106_v42, %v3417_v49  ;;  %v3201_v49 = vld [vmem:[%s4092_s8 + $0x108] sm:$0xff]  }
 0x722   : > { %v2100_v23 = vsel %vm458_vm4, %v2093_v28, %v2096_v34  ;;  %v2120_v54 = vmul.f32 %v2115_v31, %v3415_v48  ;;  %v2139_v46 = vmul.f32 %v2097_v22, %v3457_v2  ;;  %v2124_v15 = vsel %vm518_vm2, %v2123_v52, %v2121_v44  ;;  %2866 = vmatprep.subr.bf16.mxu0 %v3201_v49 }
 0x723   : > { %3074 = vrot.lane.b32.xlu1 %v3073_v47, %s3216_s14  ;;  %2921 = vmatmul.mubr.msk.bf16.vlgmr.msra.gmra.mrb[16].mxu1 %vm649_vm6, %v2207_v50  ;;  %v3078_v53 = vpack.i.bf16 %v2111_v0, %v2110_v51  ;;  %v2140_v19 = vmul.f32 %v2100_v23, %v3455_v6  ;;  %v2127_v55 = vsel %vm518_vm2, %v2121_v44, %v2123_v52  ;;  %v3203_v50 = vld [vmem:[%s4093_s9 + $0x8] sm:$0xff]  }
 0x724   : > { %2926 = vmatprep.mubr.msk.bf16.mxu1 %vm3223_vm12, %v3220_v9  ;;  %v2141_v2 = vmul.f32 %v2106_v42, %v3466_v12  ;;  %v2142_v56 = vmul.f32 %v2109_v33, %v3464_v11  ;;  %2867 = vmatpush3.bf16.msra.mxu0 %v3202_v45  ;;  %v3088_v59 = vpack.i.bf16 %v2120_v54, %v2119_v63 }
 0x725   : > { %3079 = vrot.lane.b32.xlu0 %v3078_v53, %s3216_s14  ;;  %v3083_v48 = vpack.i.bf16 %v2140_v19, %v2139_v46  ;;  %v2128_v60 = vmul.f32 %v2127_v55, %v3433_v58  ;;  %v2129_v6 = vmul.f32 %v2124_v15, %v3431_v57  ;;  %v2101_v25 = vmul.f32 %v2100_v23, %v3475_v21  ;;  %v3204_v19 = vld [vmem:[%s4094_s10] sm:$0xff]   ;;  %v3205_v15 = vld [vmem:[%s4094_s10 + $0x8] sm:$0xff]  }
 0x726   : > { %v3093_v61 = vpack.i.bf16 %v2142_v56, %v2141_v2  ;;  %v2102_v37 = vmul.f32 %v2097_v22, %v3473_v16  ;;  %2925 = vmatpush3.bf16.msra.mxu1 %v3203_v50 }
 0x727   : > { %3084 = vrot.lane.b32.xlu1 %v3083_v48, %s3215_s29  ;;  %v3098_v62 = vpack.i.bf16 %v2129_v6, %v2128_v60  ;;  %2930 = vmatprep.subr.bf16.mxu1 %v3220_v9 }
 0x729   : > { %3089 = vrot.lane.b32.xlu0 %v3088_v59, %s3215_s29 }
 0x72b   : > { %3094 = vrot.lane.b32.xlu1 %v3093_v61, %s3221_s22 }
 0x72d   : > { %3099 = vrot.lane.b32.xlu0 %v3098_v62, %s3221_s22 }
 0x795   : > { %v3075_v1 = vpop.permute.xlu1 %3074 }
 0x796   : > { %v3077_v3 = vunpack.i.h.bf16 %v3075_v1  ;;  %v3076_v11 = vunpack.i.l.bf16 %v3075_v1 }
 0x797   : > { %v3080_v12 = vpop.permute.xlu0 %3079 }
 0x798   : > { %v3082_v7 = vunpack.i.h.bf16 %v3080_v12  ;;  %v3081_v8 = vunpack.i.l.bf16 %v3080_v12  ;;  %v2200_v39 = vsel %vm649_vm6, %v3977_v24, %v3077_v3  ;;  %v2199_v43 = vsel %vm649_vm6, %v3971_v10, %v3076_v11 }
 0x799   : > { %v3085_v4 = vpop.permute.xlu1 %3084 }
 0x79a   : > { %v3087_v14 = vunpack.i.h.bf16 %v3085_v4  ;;  %v3086_v57 = vunpack.i.l.bf16 %v3085_v4  ;;  %v2193_v27 = vsel %vm649_vm6, %v2101_v25, %v3081_v8  ;;  %v2194_v28 = vsel %vm649_vm6, %v2102_v37, %v3082_v7 }
 0x79b   : > { %v3090_v58 = vpop.permute.xlu0 %3089 }
 0x79c   : > { %v3092_v20 = vunpack.i.h.bf16 %v3090_v58  ;;  %v3091_v40 = vunpack.i.l.bf16 %v3090_v58  ;;  %v2202_v21 = vsel %vm655_vm8, %v2200_v39, %v3087_v14  ;;  %v2201_v16 = vsel %vm655_vm8, %v2199_v43, %v3086_v57 }
 0x79d   : > { %v3095_v26 = vpop.permute.xlu1 %3094 }
 0x79e   : > { %v3097_v30 = vunpack.i.h.bf16 %v3095_v26  ;;  %v3096_v31 = vunpack.i.l.bf16 %v3095_v26  ;;  %v2195_v35 = vsel %vm655_vm8, %v2193_v27, %v3091_v40  ;;  %v2196_v24 = vsel %vm655_vm8, %v2194_v28, %v3092_v20 }
 0x79f   : > { %v3100_v29 = vpop.permute.xlu0 %3099 }
 0x7a0   : > { %v3102_v32 = vunpack.i.h.bf16 %v3100_v29  ;;  %v3101_v17 = vunpack.i.l.bf16 %v3100_v29  ;;  %v2203_v10 = vsel %vm661_vm10, %v2201_v16, %v3096_v31  ;;  %v2204_v18 = vsel %vm661_vm10, %v2202_v21, %v3097_v30 }
 0x7a1   : > { %v2206_v41 = vpack.c.bf16 %v2204_v18, %v2203_v10 }
 0x7a2   : > { %v2197_v36 = vsel %vm661_vm10, %v2195_v35, %v3101_v17  ;;  %v2198_v38 = vsel %vm661_vm10, %v2196_v24, %v3102_v32 }
 0x7a3   : > { %v2205_v42 = vpack.c.bf16 %v2198_v38, %v2197_v36  ;;  %2351 = vmatprep.mubr.bf16.mxu0 %v2206_v41 }
 0x7a5   : > { %2352 = vmatmul.mubr.bf16.vlgmr.msra.gmra.mrb[20].mxu0 %v2205_v42 }
 0x7f6   : > { %v2394_v33 = vpop.f32.mrb[16].mxu1 }
 0x7f7   : > { %v2922_v34 = vpop.f32.mrb[17].mxu1 }
 0x7f8   : > { %v2397_v44 = vpop.f32.mrb[18].mxu1 }
 0x7f9   : > { %v2923_v47 = vpop.f32.mrb[19].mxu1 }
 0x878   : > { %v2868_v51 = vpop.f32.mrb[20].mxu0 }
 0x879   : > { %v2869_v0 = vpop.f32.mrb[21].mxu0 }
 0x87a   : > { %v2870_v63 = vadd.f32 %v2869_v0, %v2868_v51  ;;  %v2871_v22 = vpop.f32.mrb[22].mxu0 }
 0x87b   : > { %v2872_v23 = vpop.f32.mrb[23].mxu0 }
 0x87c   : > { %v2395_v52 = vadd.f32 %v2870_v63, %v2394_v33  ;;  %v2873_v53 = vadd.f32 %v2872_v23, %v2871_v22 }
 0x87e   : > { %v2398_v54 = vadd.f32 %v2873_v53, %v2397_v44  ;;  %v2401_v46 = vmax.f32 %v2395_v52, 0.0 }
 0x880   : > { %v2402_v49 = vmax.f32 %v2398_v54, 0.0 }
 0x882   : > { %v2406_v45 = vpack.c.bf16 %v2402_v49, %v2401_v46 }
 0x884   : > { %2927 = vmatmul.mubr.msk.bf16.vlgmr.msra.gmra.mrb[20].mxu1 %vm646_vm5, %v2406_v45 }
 0x885   : > { %2934 = vmatprep.mubr.msk.bf16.mxu1 %vm3223_vm12, %v3220_v9  ;;  %2931 = vmatpush3.bf16.msra.mxu1 %v3204_v19 }
 0x886   : > { %2932 = vmatprep.subr.bf16.mxu1 %v3220_v9  ;;  %v2745_v9 = vld [vmem:[%s4095_s11] ss:$0 sm:$0xff] }
 0x889   : > { %2933 = vmatpush3.bf16.msra.mxu1 %v3205_v15 }
 0x957   : > { %v2450_v55 = vpop.f32.mrb[20].mxu1 }
 0x958   : > { %v2457_v48 = vadd.f32 %v2450_v55, %v3968_v5  ;;  %v2928_v2 = vpop.f32.mrb[21].mxu1 }
 0x959   : > { %v2453_v56 = vpop.f32.mrb[22].mxu1 }
 0x95a   : > { %v2458_v59 = vadd.f32 %v2453_v56, %v3974_v13  ;;  %v2929_v60 = vpop.f32.mrb[23].mxu1  ;;  %v2459_v6 = vmax.f32 %v2457_v48, 0.0 }
 0x95c   : > { %v2460_v61 = vmax.f32 %v2458_v59, 0.0 }
 0x95e   : > { %v2465_v62 = vpack.c.bf16 %v2460_v61, %v2459_v6 }
 0x960   : > { %2935 = vmatmul.mubr.msk.bf16.vlgmr.msra.gmra.mrb[24].mxu1 %vm649_vm6, %v2465_v62 }
 0xa33   : > { %v2522_v5 = vpop.f32.mrb[24].mxu1 }
 0xa34   : > { %v2523_v1 = vadd.f32 %v2745_v9, %v2522_v5  ;;  %v2936_v12 = vpop.f32.mrb[25].mxu1 }
 0xa35   : > { %v2525_v3 = vpop.f32.mrb[26].mxu1 }
 0xa36   : > { %2529 = vst [vmem:[%s415_s28] sm:$0xff] %v2523_v1  ;;  %v2526_v13 = vadd.f32 %v2745_v9, %v2525_v3  ;;  %v2937_v11 = vpop.f32.mrb[27].mxu1 }
 0xa38   : > { %2530 = vst [vmem:[%s415_s28 + $0x8] sm:$0xff] %v2526_v13 }
 0xa39 PF: > { %s22_s21 = sadd.s32 1, %s3212_s21  }
 0xa3a   : > { %p19_p4 = scmp.ge.s32.totalorder %s22_s21, 4  }
 0xa3c   :  { %21 = sbr.rel (!%p19_p4) target bundleno = 1 (0x1), region = 100 }

</bundles_post_ra>
